<compile_context>
chip_gen: v7x
topology: tpu7x:2x2x1
jax: 0.10.0
libtpu: 0.0.40
codegen_flags: <defaults>
</compile_context>

<pallas_src>
import math
import functools

import jax
import jax.numpy as jnp
from jax.experimental import pallas as pl
from jax.experimental.pallas import tpu as pltpu


def _cdiv(a, b):
    return -(-a // b)


def _round_up(a, b):
    return _cdiv(a, b) * b


# ----------------------------- Pallas kernels ------------------------------

def _conv3x3_s2_relu_kernel(tt, fo8, cin, cout,
                            ee_ref, eo_ref, oe_ref, oo_ref, w_ref, b_ref, o_ref):
    """3x3 / stride-2 conv + bias + ReLU for one (time-tile, freq, channel) block.

    The four refs hold the stride-2 phase decomposition of the NHWC input
    (even/odd time x even/odd freq), so every 3x3 tap is a *contiguous*
    shifted slice of a VMEM-resident slab -- patches are formed in VMEM and
    never materialised in HBM.
    """
    t0 = pl.program_id(1) * tt
    # Load each phase window once (tt+1 rows so the dt=+1 taps stay in range).
    ph = ((ee_ref[pl.ds(t0, tt + 1), :, :], eo_ref[pl.ds(t0, tt + 1), :, :]),
          (oe_ref[pl.ds(t0, tt + 1), :, :], oo_ref[pl.ds(t0, tt + 1), :, :]))

    acc = jnp.zeros((tt * fo8, cout), jnp.float32)
    for i in range(3):
        for j in range(3):
            dt, df = i // 2, j // 2
            xs = ph[i % 2][j % 2][dt:dt + tt, df:df + fo8, :]   # (tt, fo8, cin)
            xs2 = xs.reshape(tt * fo8, cin)
            w_tap = w_ref[i * 3 + j]                            # (cin, cout)
            if cin == 1:
                # conv1: C_in == 1 -> cheap VPU broadcast multiply-add.
                acc = acc + xs2.astype(jnp.float32) * w_tap.astype(jnp.float32)
            else:
                # conv2: bf16 operands, f32 accumulation on the MXU.
                acc = acc + jnp.dot(xs2, w_tap,
                                    preferred_element_type=jnp.float32)
    out = jnp.maximum(acc + b_ref[...], 0.0)
    o_ref[...] = out.reshape(tt, fo8, cout).astype(o_ref.dtype)


def _linear_posenc_kernel(xscale, x_ref, w_ref, b_ref, pe_ref, o_ref):
    """(x @ w + b) * xscale + pe for one (time-tile, K) block."""
    acc = jnp.dot(x_ref[...], w_ref[...], preferred_element_type=jnp.float32)
    o_ref[...] = ((acc + b_ref[...]) * xscale + pe_ref[...]).astype(o_ref.dtype)


# ----------------------------- kernel wrappers ------------------------------

def conv3x3_s2_relu(x_nhwc, w_taps, bias, *, out_dtype, max_time_tile=64):
    """VALID 3x3 stride-2 conv + bias + ReLU, channels-last.

    x_nhwc: (B, Tin, Fin, Cin); w_taps: (9, Cin, Cout) tap-major; bias: (1, Cout) f32.
    Returns (B, Tout, Fout, Cout) with Tout=(Tin-1)//2, Fout=(Fin-1)//2.
    """
    B, Tin, Fin, Cin = x_nhwc.shape
    Cout = w_taps.shape[2]
    Tout = (Tin - 1) // 2
    Fout = (Fin - 1) // 2
    Fo8 = _round_up(Fout, 8)                 # keep sublane dim 8-aligned in-kernel
    tt = min(Tout, max_time_tile)            # leading dim: no (8,128) constraint
    nt = _cdiv(Tout, tt)
    Tpad = nt * tt
    Tp, Fp = Tpad + 1, Fo8 + 1               # +1 so the dt/df=+1 taps are in bounds

    op_dtype = w_taps.dtype
    phases = []
    for i in (0, 1):
        for j in (0, 1):
            p = x_nhwc[:, i::2, j::2, :].astype(op_dtype)
            p = jnp.pad(p, ((0, 0),
                            (0, Tp - p.shape[1]),
                            (0, Fp - p.shape[2]),
                            (0, 0)))
            phases.append(p)

    phase_spec = pl.BlockSpec((None, Tp, Fp, Cin), lambda b, t: (b, 0, 0, 0))
    kernel = functools.partial(_conv3x3_s2_relu_kernel, tt, Fo8, Cin, Cout)
    out = pl.pallas_call(
        kernel,
        out_shape=jax.ShapeDtypeStruct((B, Tpad, Fo8, Cout), out_dtype),
        grid=(B, nt),
        in_specs=[phase_spec] * 4 + [
            pl.BlockSpec((9, Cin, Cout), lambda b, t: (0, 0, 0)),
            pl.BlockSpec((1, Cout), lambda b, t: (0, 0)),
        ],
        out_specs=pl.BlockSpec((None, tt, Fo8, Cout), lambda b, t: (b, t, 0, 0)),
        compiler_params=pltpu.CompilerParams(
            dimension_semantics=("parallel", "parallel"),
            vmem_limit_bytes=32 * 1024 * 1024),
    )(*phases, w_taps, bias)
    return out[:, :Tout, :Fout, :]


def linear_posenc(x_btk, w_kn, b_1n, pe_tn, xscale, *,
                  max_time_tile=128, out_dtype=jnp.float32):
    """(x @ w + b) * xscale + pe[t] over a (batch, time-tile) grid.

    x: (B, T, K) bf16; w: (K, N) bf16; b: (1, N) f32; pe: (>=Tpad, N) f32.
    """
    B, T, K = x_btk.shape
    N = w_kn.shape[1]
    tt = min(_round_up(T, 8), _round_up(max_time_tile, 8))
    nt = _cdiv(T, tt)
    Tpad = nt * tt
    assert pe_tn.shape[0] >= Tpad, "PE table shorter than (padded) sequence"

    x_p = jnp.pad(x_btk, ((0, 0), (0, Tpad - T), (0, 0)))
    pe_p = pe_tn[:Tpad]

    kernel = functools.partial(_linear_posenc_kernel, xscale)
    out = pl.pallas_call(
        kernel,
        out_shape=jax.ShapeDtypeStruct((B, Tpad, N), out_dtype),
        grid=(B, nt),
        in_specs=[
            pl.BlockSpec((None, tt, K), lambda b, t: (b, t, 0)),
            pl.BlockSpec((K, N), lambda b, t: (0, 0)),      # weight stays resident
            pl.BlockSpec((1, N), lambda b, t: (0, 0)),
            pl.BlockSpec((tt, N), lambda b, t: (t, 0)),     # PE table, per time-tile
        ],
        out_specs=pl.BlockSpec((None, tt, N), lambda b, t: (b, t, 0)),
        compiler_params=pltpu.CompilerParams(
            dimension_semantics=("parallel", "parallel"),
            vmem_limit_bytes=32 * 1024 * 1024),
    )(x_p, w_kn, b_1n, pe_p)
    return out[:, :T]


# ------------------------------ model glue ----------------------------------

def make_positional_encoding(length, d_model, dtype=jnp.float32):
    """Sinusoidal PE identical to PositionalEncoding.extend_pe (reverse=False).

    Note: assumes even d_model (same practical constraint as the reference).
    """
    position = jnp.arange(length, dtype=jnp.float32)[:, None]
    div_term = jnp.exp(
        jnp.arange(0, d_model, 2, dtype=jnp.float32) * -(math.log(10000.0) / d_model)
    )
    pe = jnp.zeros((length, d_model), dtype=jnp.float32)
    pe = pe.at[:, 0::2].set(jnp.sin(position * div_term))
    pe = pe.at[:, 1::2].set(jnp.cos(position * div_term))
    return pe.astype(dtype)


def init_params(key, idim, odim):
    """Deterministic synthetic parameters with the PyTorch module's shapes."""
    F1 = (idim - 1) // 2
    F2 = (F1 - 1) // 2
    k1, k2, k3, k4, k5, k6 = jax.random.split(key, 6)
    return {
        "w1": 0.1 * jax.random.normal(k1, (odim, 1, 3, 3), jnp.float32),
        "b1": 0.1 * jax.random.normal(k2, (odim,), jnp.float32),
        "w2": 0.1 * jax.random.normal(k3, (odim, odim, 3, 3), jnp.float32),
        "b2": 0.1 * jax.random.normal(k4, (odim,), jnp.float32),
        "wl": 0.1 * jax.random.normal(k5, (odim, odim * F2), jnp.float32),
        "bl": 0.1 * jax.random.normal(k6, (odim,), jnp.float32),
    }


def prepare_params(params, idim, odim, max_len=512):
    """One-time offline weight transforms (tap-major conv weights, permuted
    Linear weight, cached PE table, bf16 casts for the MXU operands)."""
    assert odim % 2 == 0, "PositionalEncoding requires an even d_model"
    F1 = (idim - 1) // 2
    F2 = (F1 - 1) // 2
    w1, w2, wl = params["w1"], params["w2"], params["wl"]
    # torch Linear flatten index is c*F2+f (NCHW); our channels-last flatten is
    # f*C+c -- permute the columns offline so no runtime transpose is needed.
    wl_p = jnp.transpose(wl.reshape(odim, odim, F2), (2, 1, 0)).reshape(F2 * odim, odim)
    return {
        "xscale": float(math.sqrt(odim)),
        # conv1 (C_in=1) stays f32 on the VPU path; conv2/linear operands bf16.
        "w1_taps": jnp.transpose(w1, (2, 3, 1, 0)).reshape(9, 1, odim).astype(jnp.float32),
        "b1": params["b1"].reshape(1, odim).astype(jnp.float32),
        "w2_taps": jnp.transpose(w2, (2, 3, 1, 0)).reshape(9, odim, odim).astype(jnp.bfloat16),
        "b2": params["b2"].reshape(1, odim).astype(jnp.float32),
        "wl_p": wl_p.astype(jnp.bfloat16),
        "bl": params["bl"].reshape(1, odim).astype(jnp.float32),
        "pe": make_positional_encoding(max_len, odim),    # built once, reused
    }


def conv2d_subsampling_forward(prep, x, x_mask):
    """Forward pass matching Conv2dSubsampling.forward (eval mode).

    x:      (B, T, idim) float32
    x_mask: (B, 1, T) bool or None
    returns (out (B, T', odim) f32, mask (B, 1, T') or None).
    """
    # conv1: (B, T, idim, 1) NHWC -> (B, T1, F1, odim), ReLU, bf16 activations.
    y1 = conv3x3_s2_relu(x[..., None], prep["w1_taps"], prep["b1"],
                         out_dtype=jnp.bfloat16)
    # conv2: (B, T1, F1, odim) -> (B, T2, F2, odim), ReLU (MXU, bf16/f32-acc).
    y2 = conv3x3_s2_relu(y1, prep["w2_taps"], prep["b2"],
                         out_dtype=jnp.bfloat16)
    B, T2, F2, C = y2.shape
    x_flat = y2.reshape(B, T2, F2 * C)                       # channels-last flatten
    out = linear_posenc(x_flat, prep["wl_p"], prep["bl"], prep["pe"],
                        prep["xscale"], out_dtype=jnp.float32)
    if x_mask is None:
        return out, None
    return out, x_mask[:, :, :-2:2][:, :, :-2:2]


# ----------------------- pure-JAX f32 reference (check) ---------------------

def _reference_forward(params, x, odim):
    xc = x[:, None, :, :]
    y = jax.lax.conv_general_dilated(xc, params["w1"], (2, 2), "VALID",
                                     dimension_numbers=("NCHW", "OIHW", "NCHW"))
    y = jax.nn.relu(y + params["b1"][None, :, None, None])
    y = jax.lax.conv_general_dilated(y, params["w2"], (2, 2), "VALID",
                                     dimension_numbers=("NCHW", "OIHW", "NCHW"))
    y = jax.nn.relu(y + params["b2"][None, :, None, None])
    b, c, t, f = y.shape
    flat = jnp.transpose(y, (0, 2, 1, 3)).reshape(b, t, c * f)
    lin = flat @ params["wl"].T + params["bl"]
    pe = make_positional_encoding(t, odim)
    return lin * math.sqrt(odim) + pe[None]


if __name__ == "__main__":
    B, T, idim, odim = 2, 16, 16, 32
    key = jax.random.PRNGKey(0)
    kp, kx = jax.random.split(key)

    params = init_params(kp, idim, odim)
    prep = prepare_params(params, idim, odim, max_len=256)

    x = jax.random.normal(kx, (B, T, idim), dtype=jnp.float32)
    x_mask = jnp.ones((B, 1, T), dtype=bool)

    fwd = jax.jit(functools.partial(conv2d_subsampling_forward, prep))
    out, mask = fwd(x, x_mask)
    jax.block_until_ready(out)

    # shape sanity: T' = ((T-1)//2 - 1)//2
    Tp = (((T - 1) // 2) - 1) // 2
    assert out.shape == (B, Tp, odim), out.shape
    assert mask.shape == (B, 1, Tp), mask.shape

    # loose numerical check vs. pure-JAX f32 reference (kernel uses bf16 operands)
    ref = _reference_forward(params, x, odim)
    max_err = float(jnp.max(jnp.abs(out - ref)))
    assert max_err < 0.3, f"mismatch vs reference: max|diff|={max_err}"

    print("KERNEL_OK")
</pallas_src>

<mosaic_0001>
module attributes {stable_mosaic.version = 11 : i64} {
  func.func @_conv3x3_s2_relu_kernel(%arg0: i32, %arg1: i32, %arg2: memref<1x8x9x1xf32, #tpu.memory_space<vmem>>, %arg3: memref<1x8x9x1xf32, #tpu.memory_space<vmem>>, %arg4: memref<1x8x9x1xf32, #tpu.memory_space<vmem>>, %arg5: memref<1x8x9x1xf32, #tpu.memory_space<vmem>>, %arg6: memref<9x1x32xf32, #tpu.memory_space<vmem>>, %arg7: memref<1x32xf32, #tpu.memory_space<vmem>>, %arg8: memref<1x7x8x32xbf16, #tpu.memory_space<vmem>>) attributes {dimension_semantics = [#tpu.dimension_semantics<parallel>, #tpu.dimension_semantics<parallel>], iteration_bounds = array<i64: 2, 1>, scalar_prefetch = 0 : i64, scratch_operands = 0 : i64, tpu.core_type = #tpu.core_type<tc>, window_params = [{transform_indices = @transform_0, window_bounds = array<i64: 1, 8, 9, 1>}, {transform_indices = @transform_1, window_bounds = array<i64: 1, 8, 9, 1>}, {transform_indices = @transform_2, window_bounds = array<i64: 1, 8, 9, 1>}, {transform_indices = @transform_3, window_bounds = array<i64: 1, 8, 9, 1>}, {pipeline_mode = #tpu.pipeline_mode<synchronous>, transform_indices = @transform_4, window_bounds = array<i64: 9, 1, 32>}, {pipeline_mode = #tpu.pipeline_mode<synchronous>, transform_indices = @transform_5, window_bounds = array<i64: 1, 32>}, {transform_indices = @transform_6, window_bounds = array<i64: 1, 7, 8, 32>}]} {
    %c7_i32 = arith.constant 7 : i32
    %0 = arith.muli %arg1, %c7_i32 : i32
    %c0 = arith.constant 0 : index
    %1 = arith.index_cast %0 : i32 to index
    %c0_0 = arith.constant 0 : index
    %c0_1 = arith.constant 0 : index
    %2 = vector.load %arg2[%c0, %1, %c0_0, %c0_1] : memref<1x8x9x1xf32, #tpu.memory_space<vmem>>, vector<1x8x9x1xf32>
    %3 = vector.shape_cast %2 : vector<1x8x9x1xf32> to vector<8x9x1xf32>
    %c0_2 = arith.constant 0 : index
    %4 = arith.index_cast %0 : i32 to index
    %c0_3 = arith.constant 0 : index
    %c0_4 = arith.constant 0 : index
    %5 = vector.load %arg3[%c0_2, %4, %c0_3, %c0_4] : memref<1x8x9x1xf32, #tpu.memory_space<vmem>>, vector<1x8x9x1xf32>
    %6 = vector.shape_cast %5 : vector<1x8x9x1xf32> to vector<8x9x1xf32>
    %c0_5 = arith.constant 0 : index
    %7 = arith.index_cast %0 : i32 to index
    %c0_6 = arith.constant 0 : index
    %c0_7 = arith.constant 0 : index
    %8 = vector.load %arg4[%c0_5, %7, %c0_6, %c0_7] : memref<1x8x9x1xf32, #tpu.memory_space<vmem>>, vector<1x8x9x1xf32>
    %9 = vector.shape_cast %8 : vector<1x8x9x1xf32> to vector<8x9x1xf32>
    %c0_8 = arith.constant 0 : index
    %10 = arith.index_cast %0 : i32 to index
    %c0_9 = arith.constant 0 : index
    %c0_10 = arith.constant 0 : index
    %11 = vector.load %arg5[%c0_8, %10, %c0_9, %c0_10] : memref<1x8x9x1xf32, #tpu.memory_space<vmem>>, vector<1x8x9x1xf32>
    %12 = vector.shape_cast %11 : vector<1x8x9x1xf32> to vector<8x9x1xf32>
    %cst = arith.constant 0.000000e+00 : f32
    %13 = vector.broadcast %cst : f32 to vector<56x32xf32>
    %14 = vector.extract_strided_slice %3 {offsets = [0, 0, 0], sizes = [7, 8, 1], strides = [1, 1, 1]} : vector<8x9x1xf32> to vector<7x8x1xf32>
    %15 = vector.shape_cast %14 : vector<7x8x1xf32> to vector<56x1xf32>
    %c0_11 = arith.constant 0 : index
    %c0_12 = arith.constant 0 : index
    %c0_13 = arith.constant 0 : index
    %16 = vector.load %arg6[%c0_11, %c0_12, %c0_13] : memref<9x1x32xf32, #tpu.memory_space<vmem>>, vector<1x1x32xf32>
    %17 = vector.shape_cast %16 : vector<1x1x32xf32> to vector<1x32xf32>
    %18 = vector.broadcast %15 : vector<56x1xf32> to vector<56x32xf32>
    %19 = vector.broadcast %17 : vector<1x32xf32> to vector<56x32xf32>
    %20 = arith.mulf %18, %19 : vector<56x32xf32>
    %21 = arith.addf %13, %20 : vector<56x32xf32>
    %22 = vector.extract_strided_slice %6 {offsets = [0, 0, 0], sizes = [7, 8, 1], strides = [1, 1, 1]} : vector<8x9x1xf32> to vector<7x8x1xf32>
    %23 = vector.shape_cast %22 : vector<7x8x1xf32> to vector<56x1xf32>
    %c1 = arith.constant 1 : index
    %c0_14 = arith.constant 0 : index
    %c0_15 = arith.constant 0 : index
    %24 = vector.load %arg6[%c1, %c0_14, %c0_15] : memref<9x1x32xf32, #tpu.memory_space<vmem>>, vector<1x1x32xf32>
    %25 = vector.shape_cast %24 : vector<1x1x32xf32> to vector<1x32xf32>
    %26 = vector.broadcast %23 : vector<56x1xf32> to vector<56x32xf32>
    %27 = vector.broadcast %25 : vector<1x32xf32> to vector<56x32xf32>
    %28 = arith.mulf %26, %27 : vector<56x32xf32>
    %29 = arith.addf %21, %28 : vector<56x32xf32>
    %30 = vector.extract_strided_slice %3 {offsets = [0, 1, 0], sizes = [7, 8, 1], strides = [1, 1, 1]} : vector<8x9x1xf32> to vector<7x8x1xf32>
    %31 = vector.shape_cast %30 : vector<7x8x1xf32> to vector<56x1xf32>
    %c2 = arith.constant 2 : index
    %c0_16 = arith.constant 0 : index
    %c0_17 = arith.constant 0 : index
    %32 = vector.load %arg6[%c2, %c0_16, %c0_17] : memref<9x1x32xf32, #tpu.memory_space<vmem>>, vector<1x1x32xf32>
    %33 = vector.shape_cast %32 : vector<1x1x32xf32> to vector<1x32xf32>
    %34 = vector.broadcast %31 : vector<56x1xf32> to vector<56x32xf32>
    %35 = vector.broadcast %33 : vector<1x32xf32> to vector<56x32xf32>
    %36 = arith.mulf %34, %35 : vector<56x32xf32>
    %37 = arith.addf %29, %36 : vector<56x32xf32>
    %38 = vector.extract_strided_slice %9 {offsets = [0, 0, 0], sizes = [7, 8, 1], strides = [1, 1, 1]} : vector<8x9x1xf32> to vector<7x8x1xf32>
    %39 = vector.shape_cast %38 : vector<7x8x1xf32> to vector<56x1xf32>
    %c3 = arith.constant 3 : index
    %c0_18 = arith.constant 0 : index
    %c0_19 = arith.constant 0 : index
    %40 = vector.load %arg6[%c3, %c0_18, %c0_19] : memref<9x1x32xf32, #tpu.memory_space<vmem>>, vector<1x1x32xf32>
    %41 = vector.shape_cast %40 : vector<1x1x32xf32> to vector<1x32xf32>
    %42 = vector.broadcast %39 : vector<56x1xf32> to vector<56x32xf32>
    %43 = vector.broadcast %41 : vector<1x32xf32> to vector<56x32xf32>
    %44 = arith.mulf %42, %43 : vector<56x32xf32>
    %45 = arith.addf %37, %44 : vector<56x32xf32>
    %46 = vector.extract_strided_slice %12 {offsets = [0, 0, 0], sizes = [7, 8, 1], strides = [1, 1, 1]} : vector<8x9x1xf32> to vector<7x8x1xf32>
    %47 = vector.shape_cast %46 : vector<7x8x1xf32> to vector<56x1xf32>
    %c4 = arith.constant 4 : index
    %c0_20 = arith.constant 0 : index
    %c0_21 = arith.constant 0 : index
    %48 = vector.load %arg6[%c4, %c0_20, %c0_21] : memref<9x1x32xf32, #tpu.memory_space<vmem>>, vector<1x1x32xf32>
    %49 = vector.shape_cast %48 : vector<1x1x32xf32> to vector<1x32xf32>
    %50 = vector.broadcast %47 : vector<56x1xf32> to vector<56x32xf32>
    %51 = vector.broadcast %49 : vector<1x32xf32> to vector<56x32xf32>
    %52 = arith.mulf %50, %51 : vector<56x32xf32>
    %53 = arith.addf %45, %52 : vector<56x32xf32>
    %54 = vector.extract_strided_slice %9 {offsets = [0, 1, 0], sizes = [7, 8, 1], strides = [1, 1, 1]} : vector<8x9x1xf32> to vector<7x8x1xf32>
    %55 = vector.shape_cast %54 : vector<7x8x1xf32> to vector<56x1xf32>
    %c5 = arith.constant 5 : index
    %c0_22 = arith.constant 0 : index
    %c0_23 = arith.constant 0 : index
    %56 = vector.load %arg6[%c5, %c0_22, %c0_23] : memref<9x1x32xf32, #tpu.memory_space<vmem>>, vector<1x1x32xf32>
    %57 = vector.shape_cast %56 : vector<1x1x32xf32> to vector<1x32xf32>
    %58 = vector.broadcast %55 : vector<56x1xf32> to vector<56x32xf32>
    %59 = vector.broadcast %57 : vector<1x32xf32> to vector<56x32xf32>
    %60 = arith.mulf %58, %59 : vector<56x32xf32>
    %61 = arith.addf %53, %60 : vector<56x32xf32>
    %62 = vector.extract_strided_slice %3 {offsets = [1, 0, 0], sizes = [7, 8, 1], strides = [1, 1, 1]} : vector<8x9x1xf32> to vector<7x8x1xf32>
    %63 = vector.shape_cast %62 : vector<7x8x1xf32> to vector<56x1xf32>
    %c6 = arith.constant 6 : index
    %c0_24 = arith.constant 0 : index
    %c0_25 = arith.constant 0 : index
    %64 = vector.load %arg6[%c6, %c0_24, %c0_25] : memref<9x1x32xf32, #tpu.memory_space<vmem>>, vector<1x1x32xf32>
    %65 = vector.shape_cast %64 : vector<1x1x32xf32> to vector<1x32xf32>
    %66 = vector.broadcast %63 : vector<56x1xf32> to vector<56x32xf32>
    %67 = vector.broadcast %65 : vector<1x32xf32> to vector<56x32xf32>
    %68 = arith.mulf %66, %67 : vector<56x32xf32>
    %69 = arith.addf %61, %68 : vector<56x32xf32>
    %70 = vector.extract_strided_slice %6 {offsets = [1, 0, 0], sizes = [7, 8, 1], strides = [1, 1, 1]} : vector<8x9x1xf32> to vector<7x8x1xf32>
    %71 = vector.shape_cast %70 : vector<7x8x1xf32> to vector<56x1xf32>
    %c7 = arith.constant 7 : index
    %c0_26 = arith.constant 0 : index
    %c0_27 = arith.constant 0 : index
    %72 = vector.load %arg6[%c7, %c0_26, %c0_27] : memref<9x1x32xf32, #tpu.memory_space<vmem>>, vector<1x1x32xf32>
    %73 = vector.shape_cast %72 : vector<1x1x32xf32> to vector<1x32xf32>
    %74 = vector.broadcast %71 : vector<56x1xf32> to vector<56x32xf32>
    %75 = vector.broadcast %73 : vector<1x32xf32> to vector<56x32xf32>
    %76 = arith.mulf %74, %75 : vector<56x32xf32>
    %77 = arith.addf %69, %76 : vector<56x32xf32>
    %78 = vector.extract_strided_slice %3 {offsets = [1, 1, 0], sizes = [7, 8, 1], strides = [1, 1, 1]} : vector<8x9x1xf32> to vector<7x8x1xf32>
    %79 = vector.shape_cast %78 : vector<7x8x1xf32> to vector<56x1xf32>
    %c8 = arith.constant 8 : index
    %c0_28 = arith.constant 0 : index
    %c0_29 = arith.constant 0 : index
    %80 = vector.load %arg6[%c8, %c0_28, %c0_29] : memref<9x1x32xf32, #tpu.memory_space<vmem>>, vector<1x1x32xf32>
    %81 = vector.shape_cast %80 : vector<1x1x32xf32> to vector<1x32xf32>
    %82 = vector.broadcast %79 : vector<56x1xf32> to vector<56x32xf32>
    %83 = vector.broadcast %81 : vector<1x32xf32> to vector<56x32xf32>
    %84 = arith.mulf %82, %83 : vector<56x32xf32>
    %85 = arith.addf %77, %84 : vector<56x32xf32>
    %c0_30 = arith.constant 0 : index
    %c0_31 = arith.constant 0 : index
    %86 = vector.load %arg7[%c0_30, %c0_31] : memref<1x32xf32, #tpu.memory_space<vmem>>, vector<1x32xf32>
    %87 = vector.broadcast %86 : vector<1x32xf32> to vector<56x32xf32>
    %88 = arith.addf %85, %87 : vector<56x32xf32>
    %cst_32 = arith.constant 0.000000e+00 : f32
    %89 = vector.broadcast %cst_32 : f32 to vector<56x32xf32>
    %90 = arith.maximumf %88, %89 : vector<56x32xf32>
    %91 = vector.shape_cast %90 : vector<56x32xf32> to vector<7x8x32xf32>
    %92 = arith.truncf %91 : vector<7x8x32xf32> to vector<7x8x32xbf16>
    %c0_33 = arith.constant 0 : index
    %c0_34 = arith.constant 0 : index
    %c0_35 = arith.constant 0 : index
    %c0_36 = arith.constant 0 : index
    %93 = vector.load %arg8[%c0_33, %c0_34, %c0_35, %c0_36] : memref<1x7x8x32xbf16, #tpu.memory_space<vmem>>, vector<1x7x8x32xbf16>
    %94 = vector.shape_cast %93 : vector<1x7x8x32xbf16> to vector<7x8x32xbf16>
    %95 = vector.shape_cast %92 : vector<7x8x32xbf16> to vector<1x7x8x32xbf16>
    tpu.vector_store %arg8[%c0_33, %c0_34, %c0_35, %c0_36], %95 {strides = array<i32>} : memref<1x7x8x32xbf16, #tpu.memory_space<vmem>>, vector<1x7x8x32xbf16>,
    return
  }
  func.func @transform_0(%arg0: i32, %arg1: i32) -> (i32, i32, i32, i32) {
    %c0_i32 = arith.constant 0 : i32
    %c0_i32_0 = arith.constant 0 : i32
    %c0_i32_1 = arith.constant 0 : i32
    %c0_i32_2 = arith.constant 0 : i32
    return %arg0, %c0_i32, %c0_i32_0, %c0_i32_1 : i32, i32, i32, i32
  }
  func.func @transform_1(%arg0: i32, %arg1: i32) -> (i32, i32, i32, i32) {
    %c0_i32 = arith.constant 0 : i32
    %c0_i32_0 = arith.constant 0 : i32
    %c0_i32_1 = arith.constant 0 : i32
    %c0_i32_2 = arith.constant 0 : i32
    return %arg0, %c0_i32, %c0_i32_0, %c0_i32_1 : i32, i32, i32, i32
  }
  func.func @transform_2(%arg0: i32, %arg1: i32) -> (i32, i32, i32, i32) {
    %c0_i32 = arith.constant 0 : i32
    %c0_i32_0 = arith.constant 0 : i32
    %c0_i32_1 = arith.constant 0 : i32
    %c0_i32_2 = arith.constant 0 : i32
    return %arg0, %c0_i32, %c0_i32_0, %c0_i32_1 : i32, i32, i32, i32
  }
  func.func @transform_3(%arg0: i32, %arg1: i32) -> (i32, i32, i32, i32) {
    %c0_i32 = arith.constant 0 : i32
    %c0_i32_0 = arith.constant 0 : i32
    %c0_i32_1 = arith.constant 0 : i32
    %c0_i32_2 = arith.constant 0 : i32
    return %arg0, %c0_i32, %c0_i32_0, %c0_i32_1 : i32, i32, i32, i32
  }
  func.func @transform_4(%arg0: i32, %arg1: i32) -> (i32, i32, i32) {
    %c0_i32 = arith.constant 0 : i32
    %c0_i32_0 = arith.constant 0 : i32
    %c0_i32_1 = arith.constant 0 : i32
    %c0_i32_2 = arith.constant 0 : i32
    return %c0_i32, %c0_i32_0, %c0_i32_1 : i32, i32, i32
  }
  func.func @transform_5(%arg0: i32, %arg1: i32) -> (i32, i32) {
    %c0_i32 = arith.constant 0 : i32
    %c0_i32_0 = arith.constant 0 : i32
    %c0_i32_1 = arith.constant 0 : i32
    return %c0_i32, %c0_i32_0 : i32, i32
  }
  func.func @transform_6(%arg0: i32, %arg1: i32) -> (i32, i32, i32, i32) {
    %c0_i32 = arith.constant 0 : i32
    %c0_i32_0 = arith.constant 0 : i32
    %c0_i32_1 = arith.constant 0 : i32
    return %arg0, %arg1, %c0_i32, %c0_i32_0 : i32, i32, i32, i32
  }
}

module attributes {stable_mosaic.version = 11 : i64} {
  func.func @_conv3x3_s2_relu_kernel(%arg0: i32, %arg1: i32, %arg2: memref<1x4x9x32xbf16, #tpu.memory_space<vmem>>, %arg3: memref<1x4x9x32xbf16, #tpu.memory_space<vmem>>, %arg4: memref<1x4x9x32xbf16, #tpu.memory_space<vmem>>, %arg5: memref<1x4x9x32xbf16, #tpu.memory_space<vmem>>, %arg6: memref<9x32x32xbf16, #tpu.memory_space<vmem>>, %arg7: memref<1x32xf32, #tpu.memory_space<vmem>>, %arg8: memref<1x3x8x32xbf16, #tpu.memory_space<vmem>>) attributes {dimension_semantics = [#tpu.dimension_semantics<parallel>, #tpu.dimension_semantics<parallel>], iteration_bounds = array<i64: 2, 1>, scalar_prefetch = 0 : i64, scratch_operands = 0 : i64, tpu.core_type = #tpu.core_type<tc>, window_params = [{transform_indices = @transform_0, window_bounds = array<i64: 1, 4, 9, 32>}, {transform_indices = @transform_1, window_bounds = array<i64: 1, 4, 9, 32>}, {transform_indices = @transform_2, window_bounds = array<i64: 1, 4, 9, 32>}, {transform_indices = @transform_3, window_bounds = array<i64: 1, 4, 9, 32>}, {pipeline_mode = #tpu.pipeline_mode<synchronous>, transform_indices = @transform_4, window_bounds = array<i64: 9, 32, 32>}, {pipeline_mode = #tpu.pipeline_mode<synchronous>, transform_indices = @transform_5, window_bounds = array<i64: 1, 32>}, {transform_indices = @transform_6, window_bounds = array<i64: 1, 3, 8, 32>}]} {
    %c3_i32 = arith.constant 3 : i32
    %0 = arith.muli %arg1, %c3_i32 : i32
    %c0 = arith.constant 0 : index
    %1 = arith.index_cast %0 : i32 to index
    %c0_0 = arith.constant 0 : index
    %c0_1 = arith.constant 0 : index
    %2 = vector.load %arg2[%c0, %1, %c0_0, %c0_1] : memref<1x4x9x32xbf16, #tpu.memory_space<vmem>>, vector<1x4x9x32xbf16>
    %3 = vector.shape_cast %2 : vector<1x4x9x32xbf16> to vector<4x9x32xbf16>
    %c0_2 = arith.constant 0 : index
    %4 = arith.index_cast %0 : i32 to index
    %c0_3 = arith.constant 0 : index
    %c0_4 = arith.constant 0 : index
    %5 = vector.load %arg3[%c0_2, %4, %c0_3, %c0_4] : memref<1x4x9x32xbf16, #tpu.memory_space<vmem>>, vector<1x4x9x32xbf16>
    %6 = vector.shape_cast %5 : vector<1x4x9x32xbf16> to vector<4x9x32xbf16>
    %c0_5 = arith.constant 0 : index
    %7 = arith.index_cast %0 : i32 to index
    %c0_6 = arith.constant 0 : index
    %c0_7 = arith.constant 0 : index
    %8 = vector.load %arg4[%c0_5, %7, %c0_6, %c0_7] : memref<1x4x9x32xbf16, #tpu.memory_space<vmem>>, vector<1x4x9x32xbf16>
    %9 = vector.shape_cast %8 : vector<1x4x9x32xbf16> to vector<4x9x32xbf16>
    %c0_8 = arith.constant 0 : index
    %10 = arith.index_cast %0 : i32 to index
    %c0_9 = arith.constant 0 : index
    %c0_10 = arith.constant 0 : index
    %11 = vector.load %arg5[%c0_8, %10, %c0_9, %c0_10] : memref<1x4x9x32xbf16, #tpu.memory_space<vmem>>, vector<1x4x9x32xbf16>
    %12 = vector.shape_cast %11 : vector<1x4x9x32xbf16> to vector<4x9x32xbf16>
    %cst = arith.constant 0.000000e+00 : f32
    %13 = vector.broadcast %cst : f32 to vector<24x32xf32>
    %14 = vector.extract_strided_slice %3 {offsets = [0, 0, 0], sizes = [3, 8, 32], strides = [1, 1, 1]} : vector<4x9x32xbf16> to vector<3x8x32xbf16>
    %15 = vector.shape_cast %14 : vector<3x8x32xbf16> to vector<24x32xbf16>
    %c0_11 = arith.constant 0 : index
    %c0_12 = arith.constant 0 : index
    %c0_13 = arith.constant 0 : index
    %16 = vector.load %arg6[%c0_11, %c0_12, %c0_13] : memref<9x32x32xbf16, #tpu.memory_space<vmem>>, vector<1x32x32xbf16>
    %17 = vector.shape_cast %16 : vector<1x32x32xbf16> to vector<32x32xbf16>
    %cst_14 = arith.constant dense<0.000000e+00> : vector<24x32xf32>
    %18 = tpu.matmul %15, %17, %cst_14 {dimension_numbers = #tpu.dot_dimension_numbers<[1], [0], [0], [1], [0, 0, 1, 1], [], []>} : vector<24x32xbf16>, vector<32x32xbf16>, vector<24x32xf32> -> vector<24x32xf32>
    %19 = arith.addf %13, %18 : vector<24x32xf32>
    %20 = vector.extract_strided_slice %6 {offsets = [0, 0, 0], sizes = [3, 8, 32], strides = [1, 1, 1]} : vector<4x9x32xbf16> to vector<3x8x32xbf16>
    %21 = vector.shape_cast %20 : vector<3x8x32xbf16> to vector<24x32xbf16>
    %c1 = arith.constant 1 : index
    %c0_15 = arith.constant 0 : index
    %c0_16 = arith.constant 0 : index
    %22 = vector.load %arg6[%c1, %c0_15, %c0_16] : memref<9x32x32xbf16, #tpu.memory_space<vmem>>, vector<1x32x32xbf16>
    %23 = vector.shape_cast %22 : vector<1x32x32xbf16> to vector<32x32xbf16>
    %cst_17 = arith.constant dense<0.000000e+00> : vector<24x32xf32>
    %24 = tpu.matmul %21, %23, %cst_17 {dimension_numbers = #tpu.dot_dimension_numbers<[1], [0], [0], [1], [0, 0, 1, 1], [], []>} : vector<24x32xbf16>, vector<32x32xbf16>, vector<24x32xf32> -> vector<24x32xf32>
    %25 = arith.addf %19, %24 : vector<24x32xf32>
    %26 = vector.extract_strided_slice %3 {offsets = [0, 1, 0], sizes = [3, 8, 32], strides = [1, 1, 1]} : vector<4x9x32xbf16> to vector<3x8x32xbf16>
    %27 = vector.shape_cast %26 : vector<3x8x32xbf16> to vector<24x32xbf16>
    %c2 = arith.constant 2 : index
    %c0_18 = arith.constant 0 : index
    %c0_19 = arith.constant 0 : index
    %28 = vector.load %arg6[%c2, %c0_18, %c0_19] : memref<9x32x32xbf16, #tpu.memory_space<vmem>>, vector<1x32x32xbf16>
    %29 = vector.shape_cast %28 : vector<1x32x32xbf16> to vector<32x32xbf16>
    %cst_20 = arith.constant dense<0.000000e+00> : vector<24x32xf32>
    %30 = tpu.matmul %27, %29, %cst_20 {dimension_numbers = #tpu.dot_dimension_numbers<[1], [0], [0], [1], [0, 0, 1, 1], [], []>} : vector<24x32xbf16>, vector<32x32xbf16>, vector<24x32xf32> -> vector<24x32xf32>
    %31 = arith.addf %25, %30 : vector<24x32xf32>
    %32 = vector.extract_strided_slice %9 {offsets = [0, 0, 0], sizes = [3, 8, 32], strides = [1, 1, 1]} : vector<4x9x32xbf16> to vector<3x8x32xbf16>
    %33 = vector.shape_cast %32 : vector<3x8x32xbf16> to vector<24x32xbf16>
    %c3 = arith.constant 3 : index
    %c0_21 = arith.constant 0 : index
    %c0_22 = arith.constant 0 : index
    %34 = vector.load %arg6[%c3, %c0_21, %c0_22] : memref<9x32x32xbf16, #tpu.memory_space<vmem>>, vector<1x32x32xbf16>
    %35 = vector.shape_cast %34 : vector<1x32x32xbf16> to vector<32x32xbf16>
    %cst_23 = arith.constant dense<0.000000e+00> : vector<24x32xf32>
    %36 = tpu.matmul %33, %35, %cst_23 {dimension_numbers = #tpu.dot_dimension_numbers<[1], [0], [0], [1], [0, 0, 1, 1], [], []>} : vector<24x32xbf16>, vector<32x32xbf16>, vector<24x32xf32> -> vector<24x32xf32>
    %37 = arith.addf %31, %36 : vector<24x32xf32>
    %38 = vector.extract_strided_slice %12 {offsets = [0, 0, 0], sizes = [3, 8, 32], strides = [1, 1, 1]} : vector<4x9x32xbf16> to vector<3x8x32xbf16>
    %39 = vector.shape_cast %38 : vector<3x8x32xbf16> to vector<24x32xbf16>
    %c4 = arith.constant 4 : index
    %c0_24 = arith.constant 0 : index
    %c0_25 = arith.constant 0 : index
    %40 = vector.load %arg6[%c4, %c0_24, %c0_25] : memref<9x32x32xbf16, #tpu.memory_space<vmem>>, vector<1x32x32xbf16>
    %41 = vector.shape_cast %40 : vector<1x32x32xbf16> to vector<32x32xbf16>
    %cst_26 = arith.constant dense<0.000000e+00> : vector<24x32xf32>
    %42 = tpu.matmul %39, %41, %cst_26 {dimension_numbers = #tpu.dot_dimension_numbers<[1], [0], [0], [1], [0, 0, 1, 1], [], []>} : vector<24x32xbf16>, vector<32x32xbf16>, vector<24x32xf32> -> vector<24x32xf32>
    %43 = arith.addf %37, %42 : vector<24x32xf32>
    %44 = vector.extract_strided_slice %9 {offsets = [0, 1, 0], sizes = [3, 8, 32], strides = [1, 1, 1]} : vector<4x9x32xbf16> to vector<3x8x32xbf16>
    %45 = vector.shape_cast %44 : vector<3x8x32xbf16> to vector<24x32xbf16>
    %c5 = arith.constant 5 : index
    %c0_27 = arith.constant 0 : index
    %c0_28 = arith.constant 0 : index
    %46 = vector.load %arg6[%c5, %c0_27, %c0_28] : memref<9x32x32xbf16, #tpu.memory_space<vmem>>, vector<1x32x32xbf16>
    %47 = vector.shape_cast %46 : vector<1x32x32xbf16> to vector<32x32xbf16>
    %cst_29 = arith.constant dense<0.000000e+00> : vector<24x32xf32>
    %48 = tpu.matmul %45, %47, %cst_29 {dimension_numbers = #tpu.dot_dimension_numbers<[1], [0], [0], [1], [0, 0, 1, 1], [], []>} : vector<24x32xbf16>, vector<32x32xbf16>, vector<24x32xf32> -> vector<24x32xf32>
    %49 = arith.addf %43, %48 : vector<24x32xf32>
    %50 = vector.extract_strided_slice %3 {offsets = [1, 0, 0], sizes = [3, 8, 32], strides = [1, 1, 1]} : vector<4x9x32xbf16> to vector<3x8x32xbf16>
    %51 = vector.shape_cast %50 : vector<3x8x32xbf16> to vector<24x32xbf16>
    %c6 = arith.constant 6 : index
    %c0_30 = arith.constant 0 : index
    %c0_31 = arith.constant 0 : index
    %52 = vector.load %arg6[%c6, %c0_30, %c0_31] : memref<9x32x32xbf16, #tpu.memory_space<vmem>>, vector<1x32x32xbf16>
    %53 = vector.shape_cast %52 : vector<1x32x32xbf16> to vector<32x32xbf16>
    %cst_32 = arith.constant dense<0.000000e+00> : vector<24x32xf32>
    %54 = tpu.matmul %51, %53, %cst_32 {dimension_numbers = #tpu.dot_dimension_numbers<[1], [0], [0], [1], [0, 0, 1, 1], [], []>} : vector<24x32xbf16>, vector<32x32xbf16>, vector<24x32xf32> -> vector<24x32xf32>
    %55 = arith.addf %49, %54 : vector<24x32xf32>
    %56 = vector.extract_strided_slice %6 {offsets = [1, 0, 0], sizes = [3, 8, 32], strides = [1, 1, 1]} : vector<4x9x32xbf16> to vector<3x8x32xbf16>
    %57 = vector.shape_cast %56 : vector<3x8x32xbf16> to vector<24x32xbf16>
    %c7 = arith.constant 7 : index
    %c0_33 = arith.constant 0 : index
    %c0_34 = arith.constant 0 : index
    %58 = vector.load %arg6[%c7, %c0_33, %c0_34] : memref<9x32x32xbf16, #tpu.memory_space<vmem>>, vector<1x32x32xbf16>
    %59 = vector.shape_cast %58 : vector<1x32x32xbf16> to vector<32x32xbf16>
    %cst_35 = arith.constant dense<0.000000e+00> : vector<24x32xf32>
    %60 = tpu.matmul %57, %59, %cst_35 {dimension_numbers = #tpu.dot_dimension_numbers<[1], [0], [0], [1], [0, 0, 1, 1], [], []>} : vector<24x32xbf16>, vector<32x32xbf16>, vector<24x32xf32> -> vector<24x32xf32>
    %61 = arith.addf %55, %60 : vector<24x32xf32>
    %62 = vector.extract_strided_slice %3 {offsets = [1, 1, 0], sizes = [3, 8, 32], strides = [1, 1, 1]} : vector<4x9x32xbf16> to vector<3x8x32xbf16>
    %63 = vector.shape_cast %62 : vector<3x8x32xbf16> to vector<24x32xbf16>
    %c8 = arith.constant 8 : index
    %c0_36 = arith.constant 0 : index
    %c0_37 = arith.constant 0 : index
    %64 = vector.load %arg6[%c8, %c0_36, %c0_37] : memref<9x32x32xbf16, #tpu.memory_space<vmem>>, vector<1x32x32xbf16>
    %65 = vector.shape_cast %64 : vector<1x32x32xbf16> to vector<32x32xbf16>
    %cst_38 = arith.constant dense<0.000000e+00> : vector<24x32xf32>
    %66 = tpu.matmul %63, %65, %cst_38 {dimension_numbers = #tpu.dot_dimension_numbers<[1], [0], [0], [1], [0, 0, 1, 1], [], []>} : vector<24x32xbf16>, vector<32x32xbf16>, vector<24x32xf32> -> vector<24x32xf32>
    %67 = arith.addf %61, %66 : vector<24x32xf32>
    %c0_39 = arith.constant 0 : index
    %c0_40 = arith.constant 0 : index
    %68 = vector.load %arg7[%c0_39, %c0_40] : memref<1x32xf32, #tpu.memory_space<vmem>>, vector<1x32xf32>
    %69 = vector.broadcast %68 : vector<1x32xf32> to vector<24x32xf32>
    %70 = arith.addf %67, %69 : vector<24x32xf32>
    %cst_41 = arith.constant 0.000000e+00 : f32
    %71 = vector.broadcast %cst_41 : f32 to vector<24x32xf32>
    %72 = arith.maximumf %70, %71 : vector<24x32xf32>
    %73 = vector.shape_cast %72 : vector<24x32xf32> to vector<3x8x32xf32>
    %74 = arith.truncf %73 : vector<3x8x32xf32> to vector<3x8x32xbf16>
    %c0_42 = arith.constant 0 : index
    %c0_43 = arith.constant 0 : index
    %c0_44 = arith.constant 0 : index
    %c0_45 = arith.constant 0 : index
    %75 = vector.load %arg8[%c0_42, %c0_43, %c0_44, %c0_45] : memref<1x3x8x32xbf16, #tpu.memory_space<vmem>>, vector<1x3x8x32xbf16>
    %76 = vector.shape_cast %75 : vector<1x3x8x32xbf16> to vector<3x8x32xbf16>
    %77 = vector.shape_cast %74 : vector<3x8x32xbf16> to vector<1x3x8x32xbf16>
    tpu.vector_store %arg8[%c0_42, %c0_43, %c0_44, %c0_45], %77 {strides = array<i32>} : memref<1x3x8x32xbf16, #tpu.memory_space<vmem>>, vector<1x3x8x32xbf16>,
    return
  }
  func.func @transform_0(%arg0: i32, %arg1: i32) -> (i32, i32, i32, i32) {
    %c0_i32 = arith.constant 0 : i32
    %c0_i32_0 = arith.constant 0 : i32
    %c0_i32_1 = arith.constant 0 : i32
    %c0_i32_2 = arith.constant 0 : i32
    return %arg0, %c0_i32, %c0_i32_0, %c0_i32_1 : i32, i32, i32, i32
  }
  func.func @transform_1(%arg0: i32, %arg1: i32) -> (i32, i32, i32, i32) {
    %c0_i32 = arith.constant 0 : i32
    %c0_i32_0 = arith.constant 0 : i32
    %c0_i32_1 = arith.constant 0 : i32
    %c0_i32_2 = arith.constant 0 : i32
    return %arg0, %c0_i32, %c0_i32_0, %c0_i32_1 : i32, i32, i32, i32
  }
  func.func @transform_2(%arg0: i32, %arg1: i32) -> (i32, i32, i32, i32) {
    %c0_i32 = arith.constant 0 : i32
    %c0_i32_0 = arith.constant 0 : i32
    %c0_i32_1 = arith.constant 0 : i32
    %c0_i32_2 = arith.constant 0 : i32
    return %arg0, %c0_i32, %c0_i32_0, %c0_i32_1 : i32, i32, i32, i32
  }
  func.func @transform_3(%arg0: i32, %arg1: i32) -> (i32, i32, i32, i32) {
    %c0_i32 = arith.constant 0 : i32
    %c0_i32_0 = arith.constant 0 : i32
    %c0_i32_1 = arith.constant 0 : i32
    %c0_i32_2 = arith.constant 0 : i32
    return %arg0, %c0_i32, %c0_i32_0, %c0_i32_1 : i32, i32, i32, i32
  }
  func.func @transform_4(%arg0: i32, %arg1: i32) -> (i32, i32, i32) {
    %c0_i32 = arith.constant 0 : i32
    %c0_i32_0 = arith.constant 0 : i32
    %c0_i32_1 = arith.constant 0 : i32
    %c0_i32_2 = arith.constant 0 : i32
    return %c0_i32, %c0_i32_0, %c0_i32_1 : i32, i32, i32
  }
  func.func @transform_5(%arg0: i32, %arg1: i32) -> (i32, i32) {
    %c0_i32 = arith.constant 0 : i32
    %c0_i32_0 = arith.constant 0 : i32
    %c0_i32_1 = arith.constant 0 : i32
    return %c0_i32, %c0_i32_0 : i32, i32
  }
  func.func @transform_6(%arg0: i32, %arg1: i32) -> (i32, i32, i32, i32) {
    %c0_i32 = arith.constant 0 : i32
    %c0_i32_0 = arith.constant 0 : i32
    %c0_i32_1 = arith.constant 0 : i32
    return %arg0, %arg1, %c0_i32, %c0_i32_0 : i32, i32, i32, i32
  }
}

module attributes {stable_mosaic.version = 11 : i64} {
  func.func @_linear_posenc_kernel(%arg0: i32, %arg1: i32, %arg2: memref<1x8x96xbf16, #tpu.memory_space<vmem>>, %arg3: memref<96x32xbf16, #tpu.memory_space<vmem>>, %arg4: memref<1x32xf32, #tpu.memory_space<vmem>>, %arg5: memref<8x32xf32, #tpu.memory_space<vmem>>, %arg6: memref<1x8x32xf32, #tpu.memory_space<vmem>>) attributes {dimension_semantics = [#tpu.dimension_semantics<parallel>, #tpu.dimension_semantics<parallel>], iteration_bounds = array<i64: 2, 1>, scalar_prefetch = 0 : i64, scratch_operands = 0 : i64, tpu.core_type = #tpu.core_type<tc>, window_params = [{transform_indices = @transform_0, window_bounds = array<i64: 1, 8, 96>}, {pipeline_mode = #tpu.pipeline_mode<synchronous>, transform_indices = @transform_1, window_bounds = array<i64: 96, 32>}, {pipeline_mode = #tpu.pipeline_mode<synchronous>, transform_indices = @transform_2, window_bounds = array<i64: 1, 32>}, {transform_indices = @transform_3, window_bounds = array<i64: 8, 32>}, {transform_indices = @transform_4, window_bounds = array<i64: 1, 8, 32>}]} {
    %c0 = arith.constant 0 : index
    %c0_0 = arith.constant 0 : index
    %c0_1 = arith.constant 0 : index
    %0 = vector.load %arg2[%c0, %c0_0, %c0_1] : memref<1x8x96xbf16, #tpu.memory_space<vmem>>, vector<1x8x96xbf16>
    %1 = vector.shape_cast %0 : vector<1x8x96xbf16> to vector<8x96xbf16>
    %c0_2 = arith.constant 0 : index
    %c0_3 = arith.constant 0 : index
    %2 = vector.load %arg3[%c0_2, %c0_3] : memref<96x32xbf16, #tpu.memory_space<vmem>>, vector<96x32xbf16>
    %cst = arith.constant dense<0.000000e+00> : vector<8x32xf32>
    %3 = tpu.matmul %1, %2, %cst {dimension_numbers = #tpu.dot_dimension_numbers<[1], [0], [0], [1], [0, 0, 1, 1], [], []>} : vector<8x96xbf16>, vector<96x32xbf16>, vector<8x32xf32> -> vector<8x32xf32>
    %c0_4 = arith.constant 0 : index
    %c0_5 = arith.constant 0 : index
    %4 = vector.load %arg4[%c0_4, %c0_5] : memref<1x32xf32, #tpu.memory_space<vmem>>, vector<1x32xf32>
    %5 = vector.broadcast %4 : vector<1x32xf32> to vector<8x32xf32>
    %6 = arith.addf %3, %5 : vector<8x32xf32>
    %cst_6 = arith.constant 5.65685415 : f32
    %7 = vector.broadcast %cst_6 : f32 to vector<8x32xf32>
    %8 = arith.mulf %6, %7 : vector<8x32xf32>
    %c0_7 = arith.constant 0 : index
    %c0_8 = arith.constant 0 : index
    %9 = vector.load %arg5[%c0_7, %c0_8] : memref<8x32xf32, #tpu.memory_space<vmem>>, vector<8x32xf32>
    %10 = arith.addf %8, %9 : vector<8x32xf32>
    %c0_9 = arith.constant 0 : index
    %c0_10 = arith.constant 0 : index
    %c0_11 = arith.constant 0 : index
    %11 = vector.load %arg6[%c0_9, %c0_10, %c0_11] : memref<1x8x32xf32, #tpu.memory_space<vmem>>, vector<1x8x32xf32>
    %12 = vector.shape_cast %11 : vector<1x8x32xf32> to vector<8x32xf32>
    %13 = vector.shape_cast %10 : vector<8x32xf32> to vector<1x8x32xf32>
    tpu.vector_store %arg6[%c0_9, %c0_10, %c0_11], %13 {strides = array<i32>} : memref<1x8x32xf32, #tpu.memory_space<vmem>>, vector<1x8x32xf32>,
    return
  }
  func.func @transform_0(%arg0: i32, %arg1: i32) -> (i32, i32, i32) {
    %c0_i32 = arith.constant 0 : i32
    %c0_i32_0 = arith.constant 0 : i32
    return %arg0, %arg1, %c0_i32 : i32, i32, i32
  }
  func.func @transform_1(%arg0: i32, %arg1: i32) -> (i32, i32) {
    %c0_i32 = arith.constant 0 : i32
    %c0_i32_0 = arith.constant 0 : i32
    %c0_i32_1 = arith.constant 0 : i32
    return %c0_i32, %c0_i32_0 : i32, i32
  }
  func.func @transform_2(%arg0: i32, %arg1: i32) -> (i32, i32) {
    %c0_i32 = arith.constant 0 : i32
    %c0_i32_0 = arith.constant 0 : i32
    %c0_i32_1 = arith.constant 0 : i32
    return %c0_i32, %c0_i32_0 : i32, i32
  }
  func.func @transform_3(%arg0: i32, %arg1: i32) -> (i32, i32) {
    %c0_i32 = arith.constant 0 : i32
    %c0_i32_0 = arith.constant 0 : i32
    return %arg1, %c0_i32 : i32, i32
  }
  func.func @transform_4(%arg0: i32, %arg1: i32) -> (i32, i32, i32) {
    %c0_i32 = arith.constant 0 : i32
    %c0_i32_0 = arith.constant 0 : i32
    return %arg0, %arg1, %c0_i32 : i32, i32, i32
  }
}

</mosaic_0001>

<bundles_post_ra>
// kernel: conv2d_subsampling_forward.5
= control target key start
LH: loop header
LB: loop body
LE: loop exit
PB: predicated region body
PF: predicated region fallthrough
CT: control target
= control target key end

     0   :  { %s561_s15 = smov 0   ;;  %s563_s16 = smov 0   ;;  %s618_s0 = inlined_call_operand.vmem [shape: bf16[2,8,96], index: 0, kind: input, shape index: {}]   ;;  %s619_s1 = inlined_call_operand.vmem [shape: bf16[96,32], index: 1, kind: input, shape index: {}]   ;;  %s620_s2 = inlined_call_operand.vmem [shape: f32[1,32], index: 2, kind: input, shape index: {}]   ;;  %s621_s3 = inlined_call_operand.vmem [shape: f32[8,32], index: 3, kind: input, shape index: {}]   ;;  %s622_s4 = inlined_call_operand.vmem [shape: f32[2,8,32], index: 4, kind: output, shape index: {}]  }
   0x1   :  { %s565_s17 = smov 0  }
   0x2 LB: > { %s26_s18 = sadd.s32 1, %s528_s16  ;;  %p442_p0 = scmp.ge.s32.totalorder %s532_s17, 1  ;;  %s532_s17 = sphi %s565_s17, %s14_s17   ;;  %s528_s16 = sphi %s563_s16, %s624_s16   ;;  %s524_s15 = sphi %s561_s15, %s623_s15  }
   0x3   : > { %p28_p1 = scmp.ge.s32.totalorder %s26_s18, 2  ;;  %p189_p2 = scmp.lt.s32.totalorder %s532_s17, 3 }
   0x5   : > { %s626_s18 = smov (%p28_p1, %s26_s18), 0  ;;  %p190_p3 = pnand %p442_p0, %p189_p2 }
   0x6   : > { %v504_v0 = vld [vmem:[%s619_s1] sm:$0xff] (!%p190_p3)   ;;  %v534_v1 = vmov (!%p190_p3), 0.0   ;;  %v505_v2 = vld [vmem:[%s619_s1 + $0x8] sm:$0xff] (!%p190_p3)   ;;  %vm535_vm0 = vmmov (!%p190_p3), 0   ;;  %v506_v3 = vld [vmem:[%s619_s1 + $0x10] sm:$0xff] (!%p190_p3)   ;;  %p223_p4 = scmp.lt.s32.totalorder (!%p190_p3), %s524_s15, 1 }
   0x7   : > { %193 = sbr.rel (%p190_p3) target bundleno = 250 (0xfa), region = 36  ;;  %462 = vmatprep.subr.bf16.mxu0 (!%p190_p3), %v534_v1  ;;  %474 = vmatprep.mubr.msk.bf16.mxu0 (!%p190_p3), %vm535_vm0, %v534_v1  ;;  %v507_v4 = vld [vmem:[%s619_s1 + $0x18] sm:$0xff] (!%p190_p3)   ;;  %v508_v5 = vld [vmem:[%s619_s1 + $0x20] sm:$0xff] (!%p190_p3)   ;;  %v509_v6 = vld [vmem:[%s619_s1 + $0x28] sm:$0xff] (!%p190_p3)   ;;  %vm298_vm1 = vcmask (!%p190_p3), 785408   ;;  %vm345_vm2 = vcmask (!%p190_p3), 261120  }
   0x8   : > { %463 = vmatpush3.bf16.msra.mxu0 (!%p190_p3), %v504_v0  ;;  %v445_v8 = vld [vmem:[%s620_s2] ss:$0 sm:$0xff] (!%p190_p3) }
   0x9   : > { %464 = vmatprep.subr.bf16.mxu0 (!%p190_p3), %v534_v1  ;;  %v343_v12 = vld [vmem:[%s621_s3] sm:$0xff] (!%p190_p3) }
   0xc   : > { %465 = vmatpush3.bf16.msra.mxu0 (!%p190_p3), %v505_v2 }
   0xd   : > { %466 = vmatprep.subr.bf16.mxu0 (!%p190_p3), %v534_v1 }
   0xe   : > { %s628_s15 = smov (!%p223_p4, %s524_s15), 1 }
   0xf   : > { %s443_s29 = sshll.u32 %s628_s15, 2  ;;  %s444_s11 = sshll.u32 %s628_s15, 3 }
  0x10   : > { %467 = vmatpush3.bf16.msra.mxu0 %v506_v3  ;;  %s229_s8 = scalar_lea.vmem %s618_s0, %s443_s29  ;;  %s240_s20 = scalar_lea.vmem %s622_s4, %s444_s11 }
  0x11   : > { %468 = vmatprep.subr.bf16.mxu0 %v534_v1  ;;  %v242_v7 = vld [vmem:[%s229_s8] sm:$0xf] }
  0x14   : > { %469 = vmatpush3.bf16.msra.mxu0 %v507_v4 }
  0x15   : > { %470 = vmatprep.subr.bf16.mxu0 %v534_v1 }
  0x18   : > { %471 = vmatpush3.bf16.msra.mxu0 %v508_v5 }
  0x19   : > { %472 = vmatprep.subr.bf16.mxu0 %v534_v1 }
  0x1c   : > { %473 = vmatpush3.bf16.msra.mxu0 %v509_v6 }
  0x1f   : > { %475 = vmatmul.mubr.msk.bf16.vlgmr.msra.gmra.mrb[0].mxu0 %vm298_vm1, %v242_v7 }
  0xf2   : > { %v336_v9 = vpop.f32.mrb[0].mxu0 }
  0xf3   : > { %v337_v10 = vadd.f32 %v445_v8, %v336_v9  ;;  %v476_v11 = vpop.f32.mrb[1].mxu0 }
  0xf4   : > { %v339_v13 = vpop.f32.mrb[2].mxu0 }
  0xf5   : > { %v342_v14 = vmul.f32 5.656854, %v337_v10  ;;  %v477_v15 = vpop.f32.mrb[3].mxu0 }
  0xf7   : > { %v344_v16 = vadd.f32 %v343_v12, %v342_v14 }
  0xf9   : > { %346 = vst.msk [vmem:[%s240_s20] sm:$0xff] %vm345_vm2, %v344_v16 }
  0xfa PF: > { %s14_s17 = sadd.s32 1, %s532_s17   ;;  %s623_s15 = smov %s528_s16 }
  0xfb   : > { %p11_p5 = scmp.ge.s32.totalorder %s14_s17, 4   ;;  %s624_s16 = smov %s626_s18 }
  0xfd   :  { %13 = sbr.rel (!%p11_p5) target bundleno = 2 (0x2), region = 69 }

// kernel: conv2d_subsampling_forward.3
= control target key start
LH: loop header
LB: loop body
LE: loop exit
PB: predicated region body
PF: predicated region fallthrough
CT: control target
= control target key end

     0   :  { %s1141_s21 = smov 0   ;;  %s1143_s22 = smov 0   ;;  %s1450_s0 = inlined_call_operand.vmem [shape: f32[2,8,9,1], index: 0, kind: input, shape index: {}]   ;;  %s1451_s1 = inlined_call_operand.vmem [shape: f32[2,8,9,1], index: 1, kind: input, shape index: {}]   ;;  %s1452_s2 = inlined_call_operand.vmem [shape: f32[2,8,9,1], index: 2, kind: input, shape index: {}]   ;;  %s1453_s3 = inlined_call_operand.vmem [shape: f32[2,8,9,1], index: 3, kind: input, shape index: {}]   ;;  %s1454_s4 = inlined_call_operand.vmem [shape: f32[9,1,32], index: 4, kind: input, shape index: {}]   ;;  %s1455_s5 = inlined_call_operand.vmem [shape: f32[1,32], index: 5, kind: input, shape index: {}]   ;;  %s1456_s6 = inlined_call_operand.vmem [shape: bf16[2,7,8,32], index: 6, kind: output, shape index: {}]  }
   0x1   :  { %s1145_s23 = smov 0  }
   0x2 LB: > { %s28_s24 = sadd.s32 1, %s1099_s22  ;;  %p1019_p0 = scmp.ge.s32.totalorder %s1103_s23, 1  ;;  %s1103_s23 = sphi %s1145_s23, %s16_s23   ;;  %s1099_s22 = sphi %s1143_s22, %s1458_s22   ;;  %s1095_s21 = sphi %s1141_s21, %s1457_s21  }
   0x3   : > { %p30_p1 = scmp.ge.s32.totalorder %s28_s24, 2  ;;  %p256_p2 = scmp.lt.s32.totalorder %s1103_s23, 3 }
   0x5   : > { %s1460_s24 = smov (%p30_p1, %s28_s24), 0  ;;  %p257_p3 = pnand %p1019_p0, %p256_p2 }
   0x6   : > { %p305_p4 = scmp.lt.s32.totalorder (!%p257_p3), %s1095_s21, 1  ;;  %v1105_v0 = vmov (!%p257_p3), 0   ;;  %vm506_vm0 = vcmask (!%p257_p3), 1046528   ;;  %vm882_vm1 = vcmask (!%p257_p3), 257024  }
   0x7   : > { %260 = sbr.rel (%p257_p3) target bundleno = 246 (0xf6), region = 44  ;;  %1080 = vset.pattern.permute.xlu1 (!%p257_p3), %v1105_v0  ;;  %1079 = vset.pattern.permute.xlu0 (!%p257_p3), %v1105_v0 }
   0xe   : > { %s1462_s21 = smov (!%p305_p4, %s1095_s21), 1 }
   0xf   : > { %s1162_s25 = sshll.u32 %s1462_s21, 7  ;;  %s1053_s14 = smul.u32 28, %s1462_s21 }
  0x10   : > { %s1168_s28 = scalar_lea.vmem %s1450_s0, %s1162_s25  ;;  %s1180_s7 = scalar_lea.vmem %s1451_s1, %s1162_s25 }
  0x11   : > { %v342_v1 = vld [vmem:[%s1168_s28 + $0x20] sm:$0xff]  ;;  %v344_v3 = vld [vmem:[%s1168_s28 + $0x30] sm:$0xff]  ;;  %v341_v13 = vld [vmem:[%s1168_s28 + $0x18] sm:$0x1]  ;;  %s1207_s10 = scalar_lea.vmem %s1452_s2, %s1162_s25  ;;  %s324_s13 = scalar_lea.vmem %s1453_s3, %s1162_s25 }
  0x12   : > { %v338_v2 = vld [vmem:[%s1168_s28] sm:$0xff]  ;;  %399 = vperm.xlu1 %1080, %v342_v1   ;;  %v340_v4 = vld [vmem:[%s1168_s28 + $0x10] sm:$0xff]  ;;  %v339_v14 = vld [vmem:[%s1168_s28 + $0x8] sm:$0x1]  ;;  %v511_v19 = vrot.slane %v341_v13, 1  ;;  %v513_v23 = vrot.slane %v342_v1, 1  ;;  %s1404_s16 = scalar_lea.vmem %s1456_s6, %s1053_s14 }
  0x13   : > { %389 = vperm.xlu0 %1079, %v338_v2   ;;  %v348_v5 = vld [vmem:[%s1168_s28 + $0x50] sm:$0xff]  ;;  %v346_v6 = vld [vmem:[%s1168_s28 + $0x40] sm:$0xff]  ;;  %v507_v15 = vrot.slane %v338_v2, 1  ;;  %v510_v16 = vrot.slane %v340_v4, 1  ;;  %v508_v20 = vrot.slane %v339_v14, 1  ;;  %v516_v24 = vrot.slane %v344_v3, 1 }
  0x14   : > { %v355_v7 = vld [vmem:[%s1180_s7] sm:$0xff]  ;;  %v356_v10 = vld [vmem:[%s1180_s7 + $0x10] sm:$0xff]  ;;  %v345_v21 = vld [vmem:[%s1168_s28 + $0x38] sm:$0x1]  ;;  %v522_v31 = vrot.slane %v348_v5, 1  ;;  %v519_v32 = vrot.slane %v346_v6, 1 }
  0x15   : > { %v350_v8 = vld [vmem:[%s1168_s28 + $0x60] sm:$0xff]  ;;  %v358_v12 = vld [vmem:[%s1180_s7 + $0x30] sm:$0xff]  ;;  %v343_v22 = vld [vmem:[%s1168_s28 + $0x28] sm:$0x1]  ;;  %v512_v25 = vsel %vm506_vm0, %v510_v16, %v511_v19  ;;  %v509_v26 = vsel %vm506_vm0, %v507_v15, %v508_v20  ;;  %v517_v27 = vrot.slane %v345_v21, 1 }
  0x16   : > { %404 = vperm.xlu1 %1080, %v344_v3   ;;  %v357_v9 = vld [vmem:[%s1180_s7 + $0x20] sm:$0xff]  ;;  %v360_v18 = vld [vmem:[%s1180_s7 + $0x50] sm:$0xff]  ;;  %v514_v28 = vrot.slane %v343_v22, 1  ;;  %v349_v29 = vld [vmem:[%s1168_s28 + $0x58] sm:$0x1]  ;;  %v525_v38 = vrot.slane %v350_v8, 1 }
  0x17   : > { %394 = vperm.xlu0 %1079, %v340_v4   ;;  %v359_v11 = vld [vmem:[%s1180_s7 + $0x40] sm:$0xff]  ;;  %v347_v30 = vld [vmem:[%s1168_s28 + $0x48] sm:$0x1]  ;;  %v518_v33 = vsel %vm506_vm0, %v516_v24, %v517_v27  ;;  %v523_v35 = vrot.slane %v349_v29, 1  ;;  %v366_v45 = vld [vmem:[%s1207_s10 + $0x10] sm:$0xff] }
  0x18   : > { %v361_v17 = vld [vmem:[%s1180_s7 + $0x60] sm:$0xff]  ;;  %v515_v34 = vsel %vm506_vm0, %v513_v23, %v514_v28  ;;  %v520_v36 = vrot.slane %v347_v30, 1  ;;  %v351_v37 = vld [vmem:[%s1168_s28 + $0x68] sm:$0x1]  ;;  %v370_v47 = vld [vmem:[%s1207_s10 + $0x30] sm:$0xff]  ;;  %v702_v62 = vrot.slane %v366_v45, 1 }
  0x19   : > { %v524_v39 = vsel %vm506_vm0, %v522_v31, %v523_v35  ;;  %v526_v41 = vrot.slane %v351_v37, 1  ;;  %v364_v42 = vld [vmem:[%s1207_s10] sm:$0xff]  ;;  %v374_v49 = vld [vmem:[%s1207_s10 + $0x50] sm:$0xff]  ;;  %v365_v54 = vld [vmem:[%s1207_s10 + $0x8] sm:$0x1] }
  0x1a   : > { %414 = vperm.xlu1 %1080, %v348_v5   ;;  %v521_v40 = vsel %vm506_vm0, %v519_v32, %v520_v36  ;;  %v368_v44 = vld [vmem:[%s1207_s10 + $0x20] sm:$0xff]  ;;  %v380_v50 = vld [vmem:[%s324_s13 + $0x10] sm:$0xff]  ;;  %v699_v55 = vrot.slane %v364_v42, 1  ;;  %v700_v58 = vrot.slane %v365_v54, 1  ;;  %v369_v59 = vld [vmem:[%s1207_s10 + $0x28] sm:$0x1] }
  0x1b   : > { %409 = vperm.xlu0 %1079, %v346_v6   ;;  %v527_v43 = vsel %vm506_vm0, %v525_v38, %v526_v41  ;;  %v372_v46 = vld [vmem:[%s1207_s10 + $0x40] sm:$0xff]  ;;  %v382_v52 = vld [vmem:[%s324_s13 + $0x30] sm:$0xff]  ;;  %v367_v60 = vld [vmem:[%s1207_s10 + $0x18] sm:$0x1]  ;;  %v705_v61 = vrot.slane %v368_v44, 1  ;;  %v706_v1 = vrot.slane %v369_v59, 1 }
  0x1c   : > { %v376_v48 = vld [vmem:[%s1207_s10 + $0x60] sm:$0xff]  ;;  %v384_v56 = vld [vmem:[%s324_s13 + $0x50] sm:$0xff]  ;;  %v701_v63 = vsel %vm506_vm0, %v699_v55, %v700_v58  ;;  %v703_v2 = vrot.slane %v367_v60, 1  ;;  %v373_v3 = vld [vmem:[%s1207_s10 + $0x48] sm:$0x1]  ;;  %v711_v5 = vrot.slane %v372_v46, 1 }
  0x1d   : > { %v379_v51 = vld [vmem:[%s324_s13] sm:$0xff]  ;;  %v371_v4 = vld [vmem:[%s1207_s10 + $0x38] sm:$0x1]  ;;  %v708_v6 = vrot.slane %v370_v47, 1  ;;  %v717_v13 = vrot.slane %v376_v48, 1  ;;  %v714_v14 = vrot.slane %v374_v49, 1 }
  0x1e   : > { %446 = vperm.xlu1 %1080, %v355_v7   ;;  %v381_v53 = vld [vmem:[%s324_s13 + $0x20] sm:$0xff]  ;;  %v707_v7 = vsel %vm506_vm0, %v705_v61, %v706_v1  ;;  %v352_v21 = vld [vmem:[%s1168_s28 + $0x70] sm:$0xff]  ;;  %v353_v22 = vld [vmem:[%s1168_s28 + $0x78] sm:$0x1] }
  0x1f   : > { %419 = vperm.xlu0 %1079, %v350_v8   ;;  %v383_v57 = vld [vmem:[%s324_s13 + $0x40] sm:$0xff]  ;;  %v704_v8 = vsel %vm506_vm0, %v702_v62, %v703_v2  ;;  %v362_v23 = vld [vmem:[%s1180_s7 + $0x70] sm:$0xff]  ;;  %v825_v24 = vrot.slane %v352_v21, 1 }
  0x20   : > { %v385_v0 = vld [vmem:[%s324_s13 + $0x60] sm:$0xff] }
  0x21   : > { %v1266_v55 = vld [vmem:[%s1454_s4 + $0x6] ss:$0 sm:$0xff]  ;;  %v1283_v2 = vld [vmem:[%s1454_s4 + $0x2] ss:$0 sm:$0xff] }
  0x22   : > { %456 = vperm.xlu1 %1080, %v357_v9   ;;  %v712_v9 = vrot.slane %v373_v3, 1 }
  0x23   : > { %451 = vperm.xlu0 %1079, %v356_v10   ;;  %v709_v10 = vrot.slane %v371_v4, 1 }
  0x24   : > { %v713_v15 = vsel %vm506_vm0, %v711_v5, %v712_v9 }
  0x25   : > { %v710_v16 = vsel %vm506_vm0, %v708_v6, %v709_v10  ;;  %v1291_v6 = vld [vmem:[%s1454_s4 + $0x7] ss:$0 sm:$0xff] }
  0x26   : > { %466 = vperm.xlu1 %1080, %v359_v11   ;;  %v377_v11 = vld [vmem:[%s1207_s10 + $0x68] sm:$0x1] }
  0x27   : > { %461 = vperm.xlu0 %1079, %v358_v12   ;;  %v375_v12 = vld [vmem:[%s1207_s10 + $0x58] sm:$0x1] }
  0x2a   : > { %476 = vperm.xlu1 %1080, %v361_v17   ;;  %v718_v17 = vrot.slane %v377_v11, 1 }
  0x2b   : > { %471 = vperm.xlu0 %1079, %v360_v18   ;;  %v715_v18 = vrot.slane %v375_v12, 1  ;;  %v1302_v12 = vld [vmem:[%s1454_s4 + $0x3] ss:$0 sm:$0xff] }
  0x2c   : > { %v719_v19 = vsel %vm506_vm0, %v717_v13, %v718_v17 }
  0x2d   : > { %v716_v20 = vsel %vm506_vm0, %v714_v14, %v715_v18 }
  0x2e   : > { %535 = vperm.xlu1 %1080, %v512_v25   ;;  %v826_v25 = vrot.slane %v353_v22, 1 }
  0x2f   : > { %531 = vperm.xlu0 %1079, %v509_v26  }
  0x30   : > { %v827_v26 = vsel %vm506_vm0, %v825_v24, %v826_v25 }
  0x32   : > { %543 = vperm.xlu1 %1080, %v518_v33  }
  0x33   : > { %539 = vperm.xlu0 %1079, %v515_v34  }
  0x36   : > { %551 = vperm.xlu1 %1080, %v524_v39  }
  0x37   : > { %547 = vperm.xlu0 %1079, %v521_v40  }
  0x3a   : > { %582 = vperm.xlu1 %1080, %v364_v42  }
  0x3b   : > { %555 = vperm.xlu0 %1079, %v527_v43  }
  0x3e   : > { %592 = vperm.xlu1 %1080, %v368_v44  }
  0x3f   : > { %587 = vperm.xlu0 %1079, %v366_v45  }
  0x42   : > { %602 = vperm.xlu1 %1080, %v372_v46  }
  0x43   : > { %597 = vperm.xlu0 %1079, %v370_v47  }
  0x46   : > { %612 = vperm.xlu1 %1080, %v376_v48  }
  0x47   : > { %607 = vperm.xlu0 %1079, %v374_v49  }
  0x4a   : > { %644 = vperm.xlu1 %1080, %v380_v50  }
  0x4b   : > { %639 = vperm.xlu0 %1079, %v379_v51  }
  0x4e   : > { %654 = vperm.xlu1 %1080, %v382_v52  }
  0x4f   : > { %649 = vperm.xlu0 %1079, %v381_v53  }
  0x52   : > { %664 = vperm.xlu1 %1080, %v384_v56   ;;  %v1029_v56 = vld [vmem:[%s1454_s4] ss:$0 sm:$0xff] }
  0x53   : > { %659 = vperm.xlu0 %1079, %v383_v57   ;;  %v1031_v57 = vld [vmem:[%s1454_s4 + $0x1] ss:$0 sm:$0xff] }
  0x56   : > { %723 = vperm.xlu1 %1080, %v701_v63  }
  0x57   : > { %669 = vperm.xlu0 %1079, %v385_v0  }
  0x5a   : > { %731 = vperm.xlu1 %1080, %v707_v7  }
  0x5b   : > { %727 = vperm.xlu0 %1079, %v704_v8  }
  0x5e   : > { %739 = vperm.xlu1 %1080, %v713_v15  }
  0x5f   : > { %735 = vperm.xlu0 %1079, %v710_v16  }
  0x62   : > { %747 = vperm.xlu1 %1080, %v719_v19  }
  0x63   : > { %743 = vperm.xlu0 %1079, %v716_v20  }
  0x66   : > { %801 = vperm.xlu1 %1080, %v362_v23   ;;  %v1317_v23 = vld [vmem:[%s1454_s4 + $0x4] ss:$0 sm:$0xff] }
  0x67   : > { %774 = vperm.xlu0 %1079, %v352_v21  }
  0x6b   : > { %831 = vperm.xlu0 %1079, %v827_v26  }
  0x91   : > { %v400_v27 = vpop.permute.xlu1 %399 }
  0x92   : > { %v390_v28 = vpop.permute.xlu0 %389  ;;  %v430_v60 = vmul.f32 %v1029_v56, %v400_v27  ;;  %v1275_v61 = vmul.f32 %v1266_v55, %v400_v27 }
  0x93   : > { %v428_v62 = vmul.f32 %v1029_v56, %v390_v28 }
  0x95   : > { %v405_v29 = vpop.permute.xlu1 %404 }
  0x96   : > { %v395_v30 = vpop.permute.xlu0 %394  ;;  %v431_v63 = vmul.f32 %v1029_v56, %v405_v29  ;;  %v1278_v0 = vmul.f32 %v1266_v55, %v405_v29 }
  0x97   : > { %v429_v3 = vmul.f32 %v1029_v56, %v395_v30  ;;  %v1286_v4 = vmul.f32 %v1266_v55, %v395_v30 }
  0x99   : > { %v415_v31 = vpop.permute.xlu1 %414 }
  0x9a   : > { %v410_v32 = vpop.permute.xlu0 %409  ;;  %v433_v5 = vmul.f32 %v1029_v56, %v415_v31  ;;  %v1294_v8 = vmul.f32 %v1266_v55, %v415_v31 }
  0x9b   : > { %v432_v9 = vmul.f32 %v1029_v56, %v410_v32  ;;  %v1297_v10 = vmul.f32 %v1266_v55, %v410_v32 }
  0x9d   : > { %v447_v33 = vpop.permute.xlu1 %446 }
  0x9e   : > { %v420_v34 = vpop.permute.xlu0 %419  ;;  %v485_v1 = vmul.f32 %v1031_v57, %v447_v33 }
  0x9f   : > { %v434_v15 = vmul.f32 %v1029_v56, %v420_v34  ;;  %v1307_v16 = vmul.f32 %v1266_v55, %v420_v34 }
  0xa0   : > { %v492_v19 = vadd.f32 %v485_v1, %v428_v62 }
  0xa1   : > { %v457_v35 = vpop.permute.xlu1 %456 }
  0xa2   : > { %v452_v36 = vpop.permute.xlu0 %451  ;;  %v487_v7 = vmul.f32 %v1031_v57, %v457_v35  ;;  %v1311_v20 = vmul.f32 %v1291_v6, %v457_v35  ;;  %v1335_v35 = vld [vmem:[%s1454_s4 + $0x8] ss:$0 sm:$0xff] }
  0xa3   : > { %v486_v11 = vmul.f32 %v1031_v57, %v452_v36  ;;  %v810_v25 = vmul.f32 %v1291_v6, %v452_v36 }
  0xa4   : > { %v494_v24 = vadd.f32 %v487_v7, %v430_v60  ;;  %v1348_v60 = vld [vmem:[%s1454_s4 + $0x5] ss:$0 sm:$0xff] }
  0xa5   : > { %v467_v37 = vpop.permute.xlu1 %466  ;;  %v493_v28 = vadd.f32 %v486_v11, %v429_v3 }
  0xa6   : > { %v462_v38 = vpop.permute.xlu0 %461  ;;  %v489_v17 = vmul.f32 %v1031_v57, %v467_v37  ;;  %v1323_v29 = vmul.f32 %v1291_v6, %v467_v37 }
  0xa7   : > { %v488_v21 = vmul.f32 %v1031_v57, %v462_v38  ;;  %v1326_v30 = vmul.f32 %v1291_v6, %v462_v38 }
  0xa8   : > { %v496_v34 = vadd.f32 %v489_v17, %v432_v9 }
  0xa9   : > { %v1239_v39 = vpop.permute.xlu1 %476  ;;  %v495_v38 = vadd.f32 %v488_v21, %v431_v63 }
  0xaa   : > { %v1241_v40 = vpop.permute.xlu0 %471  ;;  %v491_v22 = vmul.f32 %v1031_v57, %v1239_v39 }
  0xab   : > { %v490_v26 = vmul.f32 %v1031_v57, %v1241_v40  ;;  %v1342_v56 = vmul.f32 %v1291_v6, %v1241_v40 }
  0xad   : > { %v1243_v41 = vpop.permute.xlu1 %535  ;;  %v497_v62 = vadd.f32 %v490_v26, %v433_v5 }
  0xae   : > { %v532_v42 = vpop.permute.xlu0 %531  ;;  %v565_v31 = vmul.f32 %v1283_v2, %v1243_v41  ;;  %v840_v7 = vmul.f32 %v1335_v35, %v1243_v41 }
  0xaf   : > { %v564_v18 = vmul.f32 %v1283_v2, %v532_v42 }
  0xb0   : > { %v572_v63 = vadd.f32 %v565_v31, %v493_v28 }
  0xb1   : > { %v1245_v43 = vpop.permute.xlu1 %543  ;;  %v571_v36 = vadd.f32 %v564_v18, %v492_v19 }
  0xb2   : > { %v1247_v44 = vpop.permute.xlu0 %539  ;;  %v567_v1 = vmul.f32 %v1283_v2, %v1245_v43 }
  0xb3   : > { %v566_v37 = vmul.f32 %v1283_v2, %v1247_v44  ;;  %v841_v19 = vmul.f32 %v1335_v35, %v1247_v44 }
  0xb5   : > { %v1249_v45 = vpop.permute.xlu1 %551 }
  0xb6   : > { %v1251_v46 = vpop.permute.xlu0 %547 }
  0xb7   : > { %v568_v40 = vmul.f32 %v1283_v2, %v1251_v46 }
  0xb9   : > { %v583_v47 = vpop.permute.xlu1 %582 }
  0xba   : > { %v1253_v48 = vpop.permute.xlu0 %555  ;;  %v621_v27 = vmul.f32 %v1302_v12, %v583_v47  ;;  %v498_v47 = vadd.f32 %v491_v22, %v434_v15  ;;  %v573_v15 = vadd.f32 %v566_v37, %v494_v24  ;;  %v574_v22 = vadd.f32 %v567_v1, %v495_v38 }
  0xbb   : > { %v844_v38 = vmul.f32 %v1335_v35, %v1249_v45 }
  0xbc   : > { %v628_v3 = vadd.f32 %v621_v27, %v571_v36  ;;  %v575_v27 = vadd.f32 %v568_v40, %v496_v34  ;;  %v570_v34 = vmul.f32 %v1283_v2, %v1253_v48 }
  0xbd   : > { %v593_v49 = vpop.permute.xlu1 %592 }
  0xbe   : > { %v588_v50 = vpop.permute.xlu0 %587 }
  0xbf   : > { %v622_v57 = vmul.f32 %v1302_v12, %v588_v50 }
  0xc1   : > { %v1255_v51 = vpop.permute.xlu1 %602  ;;  %v629_v41 = vadd.f32 %v622_v57, %v572_v63 }
  0xc2   : > { %v1257_v52 = vpop.permute.xlu0 %597  ;;  %v625_v21 = vmul.f32 %v1302_v12, %v1255_v51 }
  0xc4   : > { %v632_v57 = vadd.f32 %v625_v21, %v575_v27 }
  0xc5   : > { %v1259_v53 = vpop.permute.xlu1 %612 }
  0xc6   : > { %v1261_v54 = vpop.permute.xlu0 %607  ;;  %v627_v63 = vmul.f32 %v1302_v12, %v1259_v53 }
  0xc9   : > { %v645_v58 = vpop.permute.xlu1 %644 }
  0xca   : > { %v640_v59 = vpop.permute.xlu0 %639  ;;  %v679_v50 = vmul.f32 %v1317_v23, %v645_v58  ;;  %v569_v58 = vmul.f32 %v1283_v2, %v1249_v45  ;;  %v626_v45 = vmul.f32 %v1302_v12, %v1261_v54  ;;  %v1387_v2 = vld [vmem:[%s1455_s5] ss:$0 sm:$0xff] }
  0xcb   : > { %v678_v42 = vmul.f32 %v1317_v23, %v640_v59  ;;  %v623_v59 = vmul.f32 %v1302_v12, %v593_v49  ;;  %v842_v49 = vmul.f32 %v1335_v35, %v1245_v43 }
  0xcc   : > { %v686_v28 = vadd.f32 %v679_v50, %v629_v41 }
  0xcd   : > { %v1304_v13 = vpop.permute.xlu1 %654  ;;  %v685_v17 = vadd.f32 %v678_v42, %v628_v3  ;;  %v630_v24 = vadd.f32 %v623_v59, %v573_v15 }
  0xce   : > { %v650_v14 = vpop.permute.xlu0 %649 }
  0xcf   : > { %v680_v5 = vmul.f32 %v1317_v23, %v650_v14  ;;  %v624_v14 = vmul.f32 %v1302_v12, %v1257_v52  ;;  %v681_v52 = vmul.f32 %v1317_v23, %v1304_v13 }
  0xd1   : > { %v1330_v32 = vpop.permute.xlu1 %664  ;;  %v687_v44 = vadd.f32 %v680_v5, %v630_v24  ;;  %v631_v59 = vadd.f32 %v624_v14, %v574_v22 }
  0xd2   : > { %v660_v33 = vpop.permute.xlu0 %659  ;;  %v683_v54 = vmul.f32 %v1317_v23, %v1330_v32 }
  0xd3   : > { %v682_v43 = vmul.f32 %v1317_v23, %v660_v33  ;;  %v576_v33 = vadd.f32 %v569_v58, %v497_v62  ;;  %v688_v53 = vadd.f32 %v681_v52, %v631_v59 }
  0xd5   : > { %v724_v9 = vpop.permute.xlu1 %723  ;;  %v689_v40 = vadd.f32 %v682_v43, %v632_v57  ;;  %v633_v21 = vadd.f32 %v626_v45, %v576_v33 }
  0xd6   : > { %v670_v11 = vpop.permute.xlu0 %669  ;;  %v756_v18 = vmul.f32 %v1348_v60, %v724_v9 }
  0xd7   : > { %v690_v14 = vadd.f32 %v683_v54, %v633_v21 }
  0xd8   : > { %v763_v26 = vadd.f32 %v756_v18, %v685_v17  ;;  %v577_v17 = vadd.f32 %v570_v34, %v498_v47 }
  0xd9   : > { %v732_v31 = vpop.permute.xlu1 %731 }
  0xda   : > { %v728_v36 = vpop.permute.xlu0 %727  ;;  %v790_v37 = vadd.f32 %v1286_v4, %v763_v26  ;;  %v758_v51 = vmul.f32 %v1348_v60, %v732_v31 }
  0xdb   : > { %v757_v42 = vmul.f32 %v1348_v60, %v728_v36 }
  0xdc   : > { %v817_v1 = vadd.f32 %v810_v25, %v790_v37  ;;  %v765_v3 = vadd.f32 %v758_v51, %v687_v44 }
  0xdd   : > { %v764_v4 = vadd.f32 %v757_v42, %v686_v28  ;;  %v740_v13 = vpop.permute.xlu1 %739 }
  0xde   : > { %v736_v50 = vpop.permute.xlu0 %735  ;;  %v847_v62 = vadd.f32 %v840_v7, %v817_v1  ;;  %v792_v25 = vadd.f32 %v1278_v0, %v765_v3  ;;  %v760_v15 = vmul.f32 %v1348_v60, %v740_v13  ;;  %v634_v0 = vadd.f32 %v627_v63, %v577_v17 }
  0xdf   : > { %v791_v9 = vadd.f32 %v1275_v61, %v764_v4  ;;  %v759_v12 = vmul.f32 %v1348_v60, %v736_v50  ;;  %v684_v61 = vmul.f32 %v1317_v23, %v670_v11 }
  0xe0   : > { %v861_v5 = vadd.f32 %v1387_v2, %v847_v62  ;;  %v819_v18 = vadd.f32 %v1326_v30, %v792_v25  ;;  %v767_v41 = vadd.f32 %v760_v15, %v689_v40 }
  0xe1   : > { %v818_v7 = vadd.f32 %v1311_v20, %v791_v9  ;;  %v766_v22 = vadd.f32 %v759_v12, %v688_v53  ;;  %v748_v47 = vpop.permute.xlu1 %747  ;;  %v691_v43 = vadd.f32 %v684_v61, %v634_v0 }
  0xe2   : > { %v744_v58 = vpop.permute.xlu0 %743  ;;  %v868_v24 = vmax.f32 %v861_v5, 0.0  ;;  %v849_v26 = vadd.f32 %v842_v49, %v819_v18  ;;  %v794_v27 = vadd.f32 %v1294_v8, %v767_v41  ;;  %v762_v30 = vmul.f32 %v1348_v60, %v748_v47 }
  0xe3   : > { %v848_v32 = vadd.f32 %v841_v19, %v818_v7  ;;  %v793_v20 = vadd.f32 %v1297_v10, %v766_v22  ;;  %v761_v23 = vmul.f32 %v1348_v60, %v744_v58  ;;  %v843_v19 = vmul.f32 %v1335_v35, %v1251_v46 }
  0xe4   : > { %v875_v11 = vpack.c.bf16 %v868_v24, %v868_v24  ;;  %v863_v28 = vadd.f32 %v1387_v2, %v849_v26  ;;  %v821_v8 = vadd.f32 %v1342_v56, %v794_v27  ;;  %v815_v10 = vmul.f32 %v1291_v6, %v1239_v39 }
  0xe5   : > { %v862_v49 = vadd.f32 %v1387_v2, %v848_v32  ;;  %v820_v31 = vadd.f32 %v1323_v29, %v793_v20  ;;  %v768_v36 = vadd.f32 %v761_v23, %v690_v14  ;;  %v802_v42 = vpop.permute.xlu1 %801  ;;  %v769_v34 = vadd.f32 %v762_v30, %v691_v43 }
  0xe6   : > { %v775_v44 = vpop.permute.xlu0 %774  ;;  %883 = vst.msk [vmem:[%s1404_s16] sm:$0xf] %vm882_vm1, %v875_v11  ;;  %v870_v60 = vmax.f32 %v863_v28, 0.0  ;;  %v851_v51 = vadd.f32 %v844_v38, %v821_v8  ;;  %v845_v29 = vmul.f32 %v1335_v35, %v1253_v48  ;;  %v816_v38 = vmul.f32 %v1291_v6, %v802_v42 }
  0xe7   : > { %v869_v37 = vmax.f32 %v862_v49, 0.0  ;;  %v850_v56 = vadd.f32 %v843_v19, %v820_v31  ;;  %v795_v46 = vadd.f32 %v1307_v16, %v768_v36  ;;  %v789_v57 = vmul.f32 %v1266_v55, %v775_v44 }
  0xe8   : > { %v877_v52 = vpack.c.bf16 %v870_v60, %v870_v60  ;;  %v865_v39 = vadd.f32 %v1387_v2, %v851_v51 }
  0xe9   : > { %v876_v33 = vpack.c.bf16 %v869_v37, %v869_v37  ;;  %v864_v1 = vadd.f32 %v1387_v2, %v850_v56  ;;  %v822_v3 = vadd.f32 %v815_v10, %v795_v46  ;;  %v796_v4 = vadd.f32 %v789_v57, %v769_v34 }
  0xea   : > { %v832_v59 = vpop.permute.xlu0 %831  ;;  %885 = vst.msk [vmem:[%s1404_s16 + $0x8] sm:$0xf] %vm882_vm1, %v877_v52  ;;  %v872_v55 = vmax.f32 %v865_v39, 0.0 }
  0xeb   : > { %884 = vst.msk [vmem:[%s1404_s16 + $0x4] sm:$0xf] %vm882_vm1, %v876_v33  ;;  %v846_v48 = vmul.f32 %v1335_v35, %v832_v59  ;;  %v871_v16 = vmax.f32 %v864_v1, 0.0  ;;  %v852_v63 = vadd.f32 %v845_v29, %v822_v3  ;;  %v823_v45 = vadd.f32 %v816_v38, %v796_v4 }
  0xec   : > { %v879_v40 = vpack.c.bf16 %v872_v55, %v872_v55 }
  0xed   : > { %v878_v13 = vpack.c.bf16 %v871_v16, %v871_v16  ;;  %v866_v50 = vadd.f32 %v1387_v2, %v852_v63  ;;  %v853_v62 = vadd.f32 %v846_v48, %v823_v45 }
  0xee   : > { %887 = vst.msk [vmem:[%s1404_s16 + $0x10] sm:$0xf] %vm882_vm1, %v879_v40 }
  0xef   : > { %886 = vst.msk [vmem:[%s1404_s16 + $0xc] sm:$0xf] %vm882_vm1, %v878_v13  ;;  %v873_v6 = vmax.f32 %v866_v50, 0.0  ;;  %v867_v25 = vadd.f32 %v1387_v2, %v853_v62 }
  0xf1   : > { %v880_v9 = vpack.c.bf16 %v873_v6, %v873_v6  ;;  %v874_v15 = vmax.f32 %v867_v25, 0.0 }
  0xf3   : > { %888 = vst.msk [vmem:[%s1404_s16 + $0x14] sm:$0xf] %vm882_vm1, %v880_v9  ;;  %v881_v35 = vpack.c.bf16 %v874_v15, %v874_v15 }
  0xf5   : > { %889 = vst.msk [vmem:[%s1404_s16 + $0x18] sm:$0xf] %vm882_vm1, %v881_v35 }
  0xf6 PF: > { %s16_s23 = sadd.s32 1, %s1103_s23   ;;  %s1457_s21 = smov %s1099_s22 }
  0xf7   : > { %p13_p5 = scmp.ge.s32.totalorder %s16_s23, 4   ;;  %s1458_s22 = smov %s1460_s24 }
  0xf9   :  { %15 = sbr.rel (!%p13_p5) target bundleno = 2 (0x2), region = 95 }

// kernel: conv2d_subsampling_forward.4
= control target key start
LH: loop header
LB: loop body
LE: loop exit
PB: predicated region body
PF: predicated region fallthrough
CT: control target
= control target key end

     0   :  { %s1655_s21 = smov 0   ;;  %s1657_s22 = smov 0   ;;  %s1855_s0 = inlined_call_operand.vmem [shape: bf16[2,4,9,32], index: 0, kind: input, shape index: {}]   ;;  %s1856_s1 = inlined_call_operand.vmem [shape: bf16[2,4,9,32], index: 1, kind: input, shape index: {}]   ;;  %s1857_s2 = inlined_call_operand.vmem [shape: bf16[2,4,9,32], index: 2, kind: input, shape index: {}]   ;;  %s1858_s3 = inlined_call_operand.vmem [shape: bf16[2,4,9,32], index: 3, kind: input, shape index: {}]   ;;  %s1859_s4 = inlined_call_operand.vmem [shape: bf16[9,32,32], index: 4, kind: input, shape index: {}]   ;;  %s1860_s5 = inlined_call_operand.vmem [shape: f32[1,32], index: 5, kind: input, shape index: {}]   ;;  %s1861_s6 = inlined_call_operand.vmem [shape: bf16[2,3,8,32], index: 6, kind: output, shape index: {}]  }
   0x1   :  { %s1659_s23 = smov 0  }
   0x2 LB: > { %s28_s24 = sadd.s32 1, %s1614_s22  ;;  %p1330_p0 = scmp.ge.s32.totalorder %s1618_s23, 1  ;;  %s1618_s23 = sphi %s1659_s23, %s16_s23   ;;  %s1614_s22 = sphi %s1657_s22, %s1865_s22   ;;  %s1610_s21 = sphi %s1655_s21, %s1864_s21  }
   0x3   : > { %p30_p1 = scmp.ge.s32.totalorder %s28_s24, 2  ;;  %p256_p2 = scmp.lt.s32.totalorder %s1618_s23, 3 }
   0x5   : > { %s1867_s24 = smov (%p30_p1, %s28_s24), 0  ;;  %p257_p3 = pnand %p1330_p0, %p256_p2 }
   0x6   : > { %v1566_v0 = vld [vmem:[%s1859_s4 + $0x10] sm:$0xff] (!%p257_p3)   ;;  %p305_p4 = scmp.lt.s32.totalorder (!%p257_p3), %s1610_s21, 1  ;;  %v1567_v1 = vld [vmem:[%s1859_s4] sm:$0xff] (!%p257_p3)   ;;  %v1568_v2 = vld [vmem:[%s1859_s4 + $0x18] sm:$0xff] (!%p257_p3)   ;;  %vm396_vm0 = vcmask (!%p257_p3), 261120   ;;  %vm1197_vm4 = vcmask (!%p257_p3), 257024  }
   0x7   : > { %260 = sbr.rel (%p257_p3) target bundleno = 280 (0x118), region = 44  ;;  %1469 = vmatprep.subr.bf16.mxu0 (!%p257_p3), %v1566_v0  ;;  %1477 = vmatprep.subr.bf16.mxu1 (!%p257_p3), %v1567_v1  ;;  %v1569_v3 = vld [vmem:[%s1859_s4 + $0x8] sm:$0xff] (!%p257_p3)   ;;  %v1576_v4 = vld [vmem:[%s1859_s4 + $0x20] sm:$0xff] (!%p257_p3)   ;;  %v1577_v5 = vld [vmem:[%s1859_s4 + $0x30] sm:$0xff] (!%p257_p3)   ;;  %vm525_vm1 = vsmask.f32 (!%p257_p3), 3328 }
   0x8   : > { %1470 = vmatpush3.bf16.msra.mxu0 (!%p257_p3), %v1566_v0  ;;  %1478 = vmatpush3.bf16.msra.mxu1 (!%p257_p3), %v1567_v1  ;;  %v1578_v24 = vld [vmem:[%s1859_s4 + $0x28] sm:$0xff] (!%p257_p3)   ;;  %v1579_v25 = vld [vmem:[%s1859_s4 + $0x38] sm:$0xff] (!%p257_p3)   ;;  %vm526_vm2 = vsmask.f32 (!%p257_p3), 7440  ;;  %v1580_v35 = vld [vmem:[%s1859_s4 + $0x40] sm:$0xff] (!%p257_p3)  }
   0x9   : > { %1471 = vmatprep.subr.bf16.mxu0 (!%p257_p3), %v1568_v2  ;;  %1479 = vmatprep.subr.bf16.mxu1 (!%p257_p3), %v1569_v3  ;;  %vm1753_vm3 = vmor (!%p257_p3), %vm525_vm1, %vm526_vm2  ;;  %v1583_v44 = vld [vmem:[%s1859_s4 + $0x50] sm:$0xff] (!%p257_p3)   ;;  %v1585_v62 = vld [vmem:[%s1859_s4 + $0x58] sm:$0xff] (!%p257_p3)  }
   0xc   : > { %1472 = vmatpush3.bf16.msra.mxu0 (!%p257_p3), %v1568_v2  ;;  %1480 = vmatpush3.bf16.msra.mxu1 (!%p257_p3), %v1569_v3  ;;  %v1584_v3 = vld [vmem:[%s1859_s4 + $0x48] sm:$0xff] (!%p257_p3)  }
   0xd   : > { %1485 = vmatprep.subr.bf16.mxu0 (!%p257_p3), %v1576_v4  ;;  %1493 = vmatprep.subr.bf16.mxu1 (!%p257_p3), %v1577_v5 }
   0xe   : > { %s1869_s21 = smov (!%p305_p4, %s1610_s21), 1 }
   0xf   : > { %s1688_s9 = sshll.u32 %s1869_s21, 5  ;;  %s1541_s13 = smul.u32 12, %s1869_s21 }
  0x10   : > { %s1697_s14 = scalar_lea.vmem %s1855_s0, %s1688_s9  ;;  %s1703_s17 = scalar_lea.vmem %s1856_s1, %s1688_s9 }
  0x11   : > { %v350_v6 = vld [vmem:[%s1703_s17] sm:$0xf]  ;;  %v1710_v7 = vld [vmem:[%s1703_s17 + $0x8] sm:$0xf]  ;;  %v1713_v8 = vld [vmem:[%s1703_s17 + $0x10] sm:$0xf]  ;;  %s1748_s30 = scalar_lea.vmem %s1857_s2, %s1688_s9  ;;  %s324_s18 = scalar_lea.vmem %s1858_s3, %s1688_s9 }
  0x12   : > { %v1344_v9 = vcombine.low %v350_v6, %v1710_v7  ;;  %v1345_v10 = vcombine.low %v1713_v8, %v1713_v8  ;;  %v340_v11 = vld [vmem:[%s1697_s14] sm:$0xf]  ;;  %v1720_v12 = vld [vmem:[%s1697_s14 + $0x8] sm:$0xf]  ;;  %v1723_v15 = vld [vmem:[%s1697_s14 + $0x10] sm:$0xf] }
  0x13   : > { %v529_v13 = vshrl.u32 %v340_v11, 16  ;;  %v532_v14 = vshll.u32 %v340_v11, 16  ;;  %v1350_v16 = vcombine.low %v340_v11, %v1720_v12  ;;  %v543_v17 = vshrl.u32 %v1720_v12, 16  ;;  %v341_v31 = vld [vmem:[%s1697_s14 + $0x4] sm:$0x1] }
  0x14   : > { %1473 = vmatprep.mubr.msk.bf16.mxu0 %vm396_vm0, %v1344_v9  ;;  %v546_v18 = vshll.u32 %v1720_v12, 16  ;;  %v1351_v19 = vcombine.low %v1723_v15, %v1723_v15  ;;  %v557_v22 = vshrl.u32 %v1723_v15, 16  ;;  %v560_v23 = vshll.u32 %v1723_v15, 16  ;;  %v343_v32 = vld [vmem:[%s1697_s14 + $0xc] sm:$0x1] }
  0x15   : > { %v531_v20 = vrot.slane %v529_v13, 4  ;;  %v534_v21 = vrot.slane %v532_v14, 5  ;;  %1474 = vmatmul.mubr.msk.bf16.vlgmr.msra.gmra.mrb[0].mxu0 %vm396_vm0, %v1345_v10  ;;  %1481 = vmatprep.mubr.msk.bf16.mxu1 %vm396_vm0, %v1350_v16  ;;  %v545_v26 = vrot.slane %v543_v17, 4  ;;  %v538_v34 = vshll.u32 %v341_v31, 16  ;;  %v345_v39 = vld [vmem:[%s1697_s14 + $0x14] sm:$0x1] }
  0x16   : > { %v548_v27 = vrot.slane %v546_v18, 5  ;;  %1486 = vmatpush3.bf16.msra.mxu0 %v1576_v4  ;;  %1482 = vmatmul.mubr.msk.bf16.vlgmr.msra.gmra.mrb[0].mxu1 %vm396_vm0, %v1351_v19  ;;  %v559_v29 = vrot.slane %v557_v22, 4  ;;  %v562_v30 = vrot.slane %v560_v23, 5  ;;  %v552_v38 = vshll.u32 %v343_v32, 16  ;;  %v356_v47 = vld [vmem:[%s1748_s30] sm:$0xf] }
  0x17   : > { %v535_v28 = vor.u32 %v534_v21, %v531_v20  ;;  %1487 = vmatprep.subr.bf16.mxu0 %v1578_v24  ;;  %1494 = vmatpush3.bf16.msra.mxu1 %v1577_v5  ;;  %v540_v42 = vrot.slane %v538_v34, 5  ;;  %v566_v43 = vshll.u32 %v345_v39, 16  ;;  %v358_v48 = vld [vmem:[%s1748_s30 + $0x8] sm:$0xf]  ;;  %v814_v52 = vshrl.u32 %v356_v47, 16  ;;  %v1588_v14 = vld [vmem:[%s1859_s4 + $0x60] sm:$0xff]  }
  0x18   : > { %v549_v33 = vor.u32 %v548_v27, %v545_v26  ;;  %1495 = vmatprep.subr.bf16.mxu1 %v1579_v25  ;;  %v563_v40 = vor.u32 %v562_v30, %v559_v29  ;;  %v554_v45 = vrot.slane %v552_v38, 5  ;;  %v1370_v51 = vcombine.low %v356_v47, %v358_v48  ;;  %v360_v53 = vld [vmem:[%s1748_s30 + $0x10] sm:$0xf]  ;;  %v1586_v6 = vld [vmem:[%s324_s18] ss:$8 sps:$4 sm:$0xff]  }
  0x19   : > { %v536_v36 = vrot.slane %v535_v28, 4  ;;  %v568_v50 = vrot.slane %v566_v43, 5  ;;  %v817_v55 = vshll.u32 %v356_v47, 16  ;;  %v828_v56 = vshrl.u32 %v358_v48, 16  ;;  %v1587_v16 = vld [vmem:[%s324_s18 + $0x10] ss:$0 sps:$4 sm:$0xff]   ;;  %s333_s18 = scalar_lea.vmem %s1861_s6, %s1541_s13 }
  0x1a   : > { %v550_v41 = vrot.slane %v549_v33, 4  ;;  %1488 = vmatpush3.bf16.msra.mxu0 %v1578_v24  ;;  %v564_v46 = vrot.slane %v563_v40, 4  ;;  %v831_v57 = vshll.u32 %v358_v48, 16  ;;  %1497 = vmatprep.mubr.msk.bf16.mxu1 %vm396_vm0, %v1370_v51  ;;  %v816_v60 = vrot.slane %v814_v52, 4  ;;  %v357_v17 = vld [vmem:[%s1748_s30 + $0x4] sm:$0x1] }
  0x1b   : > { %1501 = vmatprep.subr.bf16.mxu0 %v1580_v35  ;;  %v541_v49 = vsel %vm1753_vm3, %v536_v36, %v540_v42  ;;  %1496 = vmatpush3.bf16.msra.mxu1 %v1579_v25  ;;  %v1371_v61 = vcombine.low %v360_v53, %v360_v53  ;;  %v819_v0 = vrot.slane %v817_v55, 5  ;;  %v830_v1 = vrot.slane %v828_v56, 4  ;;  %v359_v18 = vld [vmem:[%s1748_s30 + $0xc] sm:$0x1]  ;;  %v361_v23 = vld [vmem:[%s1748_s30 + $0x14] sm:$0x1] }
  0x1c   : > { %v1768_v54 = vsel %vm1753_vm3, %v550_v41, %v554_v45  ;;  %1509 = vmatprep.subr.bf16.mxu1 %v1583_v44  ;;  %v1773_v59 = vsel %vm1753_vm3, %v564_v46, %v568_v50  ;;  %v833_v2 = vrot.slane %v831_v57, 5  ;;  %v842_v4 = vshrl.u32 %v360_v53, 16  ;;  %v1589_v26 = vld [vmem:[%s1859_s4 + $0x70] sm:$0xff]   ;;  %v1590_v32 = vld [vmem:[%s1859_s4 + $0x68] sm:$0xff]   ;;  %v1591_v40 = vld [vmem:[%s1859_s4 + $0x78] sm:$0xff]  }
  0x1d   : > { %v1360_v58 = vcombine.low %v541_v49, %v1768_v54  ;;  %v1361_v63 = vcombine.low %v1773_v59, %v1773_v59  ;;  %v845_v5 = vshll.u32 %v360_v53, 16  ;;  %v820_v9 = vor.u32 %v819_v0, %v816_v60  ;;  %v347_v42 = vld [vmem:[%s1697_s14 + $0x1c] sm:$0x1]  ;;  %v1595_v49 = vld [vmem:[%s1859_s4 + $0x88] sm:$0xff]   ;;  %v1573_v50 = vld [vmem:[%s1703_s17 + $0x18] ss:$0 sps:$4 sm:$0xff]  }
  0x1e   : > { %1498 = vmatmul.mubr.msk.bf16.vlgmr.msra.gmra.mrb[4].mxu1 %vm396_vm0, %v1371_v61  ;;  %v834_v10 = vor.u32 %v833_v2, %v830_v1  ;;  %v844_v11 = vrot.slane %v842_v4, 4  ;;  %v823_v20 = vshll.u32 %v357_v17, 16  ;;  %v837_v22 = vshll.u32 %v359_v18, 16 }
  0x1f   : > { %1489 = vmatprep.mubr.msk.bf16.mxu0 %vm396_vm0, %v1360_v58  ;;  %1510 = vmatpush3.bf16.msra.mxu1 %v1583_v44  ;;  %v847_v13 = vrot.slane %v845_v5, 5  ;;  %v821_v19 = vrot.slane %v820_v9, 4  ;;  %v851_v25 = vshll.u32 %v361_v23, 16  ;;  %v1400_v29 = vcombine.low %v1720_v12, %v1723_v15 }
  0x20   : > { %1490 = vmatmul.mubr.msk.bf16.vlgmr.msra.gmra.mrb[4].mxu0 %vm396_vm0, %v1361_v63  ;;  %1511 = vmatprep.subr.bf16.mxu1 %v1585_v62  ;;  %v835_v21 = vrot.slane %v834_v10, 4  ;;  %v825_v27 = vrot.slane %v823_v20, 5  ;;  %v839_v28 = vrot.slane %v837_v22, 5  ;;  %v1410_v36 = vcombine.low %v1710_v7, %v1713_v8  ;;  %v1594_v8 = vld [vmem:[%s1859_s4 + $0x80] sm:$0xff]  }
  0x21   : > { %1502 = vmatpush3.bf16.msra.mxu0 %v1580_v35  ;;  %1505 = vmatprep.mubr.msk.bf16.mxu0 %vm396_vm0, %v1586_v6  ;;  %v848_v24 = vor.u32 %v847_v13, %v844_v11  ;;  %v853_v31 = vrot.slane %v851_v25, 5  ;;  %v346_v35 = vld [vmem:[%s1697_s14 + $0x18] sm:$0xf]  ;;  %v1100_v43 = vshll.u32 %v347_v42, 16  ;;  %v1420_v46 = vcombine.low %v1768_v54, %v1773_v59 }
  0x22   : > { %1503 = vmatprep.subr.bf16.mxu0 %v1584_v3  ;;  %v826_v33 = vsel %vm1753_vm3, %v821_v19, %v825_v27  ;;  %v840_v34 = vsel %vm1753_vm3, %v835_v21, %v839_v28  ;;  %v1091_v38 = vshrl.u32 %v346_v35, 16  ;;  %v1094_v41 = vshll.u32 %v346_v35, 16 }
  0x23   : > { %1512 = vmatpush3.bf16.msra.mxu1 %v1585_v62  ;;  %v849_v30 = vrot.slane %v848_v24, 4  ;;  %v1390_v12 = vcombine.low %v826_v33, %v840_v34  ;;  %v1401_v45 = vcombine.low %v346_v35, %v346_v35  ;;  %v1102_v48 = vrot.slane %v1100_v43, 5 }
  0x24   : > { %1525 = vmatprep.subr.bf16.mxu1 %v1589_v26  ;;  %v1093_v7 = vrot.slane %v1091_v38, 4  ;;  %v1096_v44 = vrot.slane %v1094_v41, 5 }
  0x25   : > { %1504 = vmatpush3.bf16.msra.mxu0 %v1584_v3  ;;  %v854_v15 = vsel %vm1753_vm3, %v849_v30, %v853_v31  ;;  %1513 = vmatprep.mubr.msk.bf16.mxu1 %vm396_vm0, %v1390_v12 }
  0x26   : > { %1517 = vmatprep.subr.bf16.mxu0 %v1588_v14  ;;  %v1391_v39 = vcombine.low %v854_v15, %v854_v15  ;;  %v1097_v47 = vor.u32 %v1096_v44, %v1093_v7  ;;  %v1426_v44 = vld [vmem:[%s1860_s5] ss:$0 sm:$0xff] }
  0x28   : > { %1506 = vmatmul.mubr.msk.bf16.vlgmr.msra.gmra.mrb[8].mxu0 %vm396_vm0, %v1587_v16  ;;  %1514 = vmatmul.mubr.msk.bf16.vlgmr.msra.gmra.mrb[8].mxu1 %vm396_vm0, %v1391_v39  ;;  %v1098_v51 = vrot.slane %v1097_v47, 4 }
  0x29   : > { %1518 = vmatpush3.bf16.msra.mxu0 %v1588_v14  ;;  %1521 = vmatprep.mubr.msk.bf16.mxu0 %vm396_vm0, %v1400_v29 }
  0x2a   : > { %1519 = vmatprep.subr.bf16.mxu0 %v1590_v32  ;;  %1526 = vmatpush3.bf16.msra.mxu1 %v1589_v26  ;;  %v1103_v52 = vsel %vm1753_vm3, %v1098_v51, %v1102_v48 }
  0x2b   : > { %1529 = vmatprep.mubr.msk.bf16.mxu1 %vm396_vm0, %v1410_v36  ;;  %1527 = vmatprep.subr.bf16.mxu1 %v1591_v40  ;;  %v1421_v53 = vcombine.low %v1103_v52, %v1103_v52 }
  0x2d   : > { %1520 = vmatpush3.bf16.msra.mxu0 %v1590_v32 }
  0x2e   : > { %1533 = vmatprep.subr.bf16.mxu0 %v1594_v8  ;;  %1528 = vmatpush3.bf16.msra.mxu1 %v1591_v40 }
  0x30   : > { %1522 = vmatmul.mubr.msk.bf16.vlgmr.msra.gmra.mrb[12].mxu0 %vm396_vm0, %v1401_v45 }
  0x31   : > { %1534 = vmatpush3.bf16.msra.mxu0 %v1594_v8  ;;  %1537 = vmatprep.mubr.msk.bf16.mxu0 %vm396_vm0, %v1420_v46 }
  0x32   : > { %1535 = vmatprep.subr.bf16.mxu0 %v1595_v49  ;;  %1530 = vmatmul.mubr.msk.bf16.vlgmr.msra.gmra.mrb[12].mxu1 %vm396_vm0, %v1573_v50 }
  0x35   : > { %1536 = vmatpush3.bf16.msra.mxu0 %v1595_v49 }
  0x38   : > { %1538 = vmatmul.mubr.msk.bf16.vlgmr.msra.gmra.mrb[16].mxu0 %vm396_vm0, %v1421_v53 }
  0xe8   : > { %v1475_v54 = vpop.f32.mrb[0].mxu0 }
  0xe9   : > { %v437_v55 = vpop.f32.mrb[1].mxu0  ;;  %v1483_v56 = vpop.f32.mrb[0].mxu1 }
  0xea   : > { %v1476_v57 = vpop.f32.mrb[2].mxu0  ;;  %v520_v58 = vadd.f32 %v1483_v56, %v1475_v54  ;;  %v511_v59 = vpop.f32.mrb[1].mxu1 }
  0xeb   : > { %v440_v60 = vpop.f32.mrb[3].mxu0  ;;  %v512_v61 = vadd.f32 %v511_v59, %v437_v55  ;;  %v1484_v62 = vpop.f32.mrb[2].mxu1 }
  0xec   : > { %v514_v63 = vpop.f32.mrb[3].mxu1 }
  0xed   : > { %v515_v0 = vadd.f32 %v514_v63, %v440_v60 }
  0xf1   : > { %v1499_v37 = vpop.f32.mrb[4].mxu1 }
  0xf2   : > { %v714_v2 = vpop.f32.mrb[5].mxu1 }
  0xf3   : > { %v1491_v1 = vpop.f32.mrb[4].mxu0  ;;  %v1500_v5 = vpop.f32.mrb[6].mxu1 }
  0xf4   : > { %v648_v3 = vadd.f32 %v1491_v1, %v520_v58  ;;  %v632_v4 = vpop.f32.mrb[5].mxu0  ;;  %v717_v10 = vpop.f32.mrb[7].mxu1 }
  0xf5   : > { %v646_v6 = vadd.f32 %v632_v4, %v512_v61  ;;  %v1492_v9 = vpop.f32.mrb[6].mxu0 }
  0xf6   : > { %v730_v11 = vadd.f32 %v1499_v37, %v648_v3  ;;  %v635_v13 = vpop.f32.mrb[7].mxu0 }
  0xf7   : > { %v647_v14 = vadd.f32 %v635_v13, %v515_v0  ;;  %v728_v16 = vadd.f32 %v714_v2, %v646_v6 }
  0xf9   : > { %v729_v17 = vadd.f32 %v717_v10, %v647_v14 }
  0xfb   : > { %v1507_v18 = vpop.f32.mrb[8].mxu0  ;;  %v1515_v23 = vpop.f32.mrb[8].mxu1 }
  0xfc   : > { %v812_v19 = vadd.f32 %v1507_v18, %v730_v11  ;;  %v796_v20 = vpop.f32.mrb[9].mxu0  ;;  %v917_v27 = vpop.f32.mrb[9].mxu1 }
  0xfd   : > { %v810_v21 = vadd.f32 %v796_v20, %v728_v16  ;;  %v1508_v22 = vpop.f32.mrb[10].mxu0  ;;  %v1516_v29 = vpop.f32.mrb[10].mxu1 }
  0xfe   : > { %v799_v24 = vpop.f32.mrb[11].mxu0  ;;  %v933_v25 = vadd.f32 %v1515_v23, %v812_v19  ;;  %v920_v30 = vpop.f32.mrb[11].mxu1 }
  0xff   : > { %v811_v26 = vadd.f32 %v799_v24, %v729_v17  ;;  %v931_v28 = vadd.f32 %v917_v27, %v810_v21 }
 0x101   : > { %v932_v31 = vadd.f32 %v920_v30, %v811_v26 }
 0x103   : > { %v1523_v32 = vpop.f32.mrb[12].mxu0 }
 0x104   : > { %v1011_v33 = vadd.f32 %v1523_v32, %v933_v25  ;;  %v995_v34 = vpop.f32.mrb[13].mxu0 }
 0x105   : > { %v1009_v35 = vadd.f32 %v995_v34, %v931_v28  ;;  %v1524_v36 = vpop.f32.mrb[14].mxu0  ;;  %v1531_v12 = vpop.f32.mrb[12].mxu1 }
 0x106   : > { %v998_v15 = vpop.f32.mrb[15].mxu0  ;;  %v1089_v38 = vadd.f32 %v1531_v12, %v1011_v33  ;;  %v1073_v40 = vpop.f32.mrb[13].mxu1 }
 0x107   : > { %v1010_v39 = vadd.f32 %v998_v15, %v932_v31  ;;  %v1087_v41 = vadd.f32 %v1073_v40, %v1009_v35  ;;  %v1532_v42 = vpop.f32.mrb[14].mxu1 }
 0x108   : > { %v1076_v7 = vpop.f32.mrb[15].mxu1 }
 0x109   : > { %v1088_v8 = vadd.f32 %v1076_v7, %v1010_v39 }
 0x10b   : > { %v1539_v43 = vpop.f32.mrb[16].mxu0 }
 0x10c   : > { %v1180_v45 = vadd.f32 %v1539_v43, %v1089_v38  ;;  %v1164_v46 = vpop.f32.mrb[17].mxu0 }
 0x10d   : > { %v1178_v47 = vadd.f32 %v1164_v46, %v1087_v41  ;;  %v1540_v48 = vpop.f32.mrb[18].mxu0 }
 0x10e   : > { %v1190_v49 = vadd.f32 %v1426_v44, %v1180_v45  ;;  %v1167_v50 = vpop.f32.mrb[19].mxu0 }
 0x10f   : > { %v1188_v51 = vadd.f32 %v1426_v44, %v1178_v47  ;;  %v1179_v52 = vadd.f32 %v1167_v50, %v1088_v8 }
 0x110   : > { %v1193_v53 = vmax.f32 %v1190_v49, 0.0 }
 0x111   : > { %v1191_v54 = vmax.f32 %v1188_v51, 0.0  ;;  %v1189_v55 = vadd.f32 %v1426_v44, %v1179_v52 }
 0x112   : > { %v1196_v56 = vpack.c.bf16 %v1193_v53, %v1193_v53 }
 0x113   : > { %v1194_v57 = vpack.c.bf16 %v1191_v54, %v1191_v54  ;;  %v1192_v58 = vmax.f32 %v1189_v55, 0.0 }
 0x114   : > { %1200 = vst.msk [vmem:[%s333_s18 + $0x8] sm:$0xf] %vm1197_vm4, %v1196_v56 }
 0x115   : > { %1198 = vst.msk [vmem:[%s333_s18] sm:$0xf] %vm1197_vm4, %v1194_v57  ;;  %v1195_v59 = vpack.c.bf16 %v1192_v58, %v1192_v58 }
 0x117   : > { %1199 = vst.msk [vmem:[%s333_s18 + $0x4] sm:$0xf] %vm1197_vm4, %v1195_v59 }
 0x118 PF: > { %s16_s23 = sadd.s32 1, %s1618_s23   ;;  %s1864_s21 = smov %s1614_s22 }
 0x119   : > { %p13_p5 = scmp.ge.s32.totalorder %s16_s23, 4   ;;  %s1865_s22 = smov %s1867_s24 }
 0x11b   :  { %15 = sbr.rel (!%p13_p5) target bundleno = 2 (0x2), region = 95 }

</bundles_post_ra>
